<compile_context>
chip_gen: v7x
topology: tpu7x:2x2x1
jax: 0.10.0
libtpu: 0.0.40
codegen_flags: <defaults>
</compile_context>

<pallas_src>
import jax
import jax.numpy as jnp
from jax.experimental import pallas as pl
from jax.experimental.pallas import tpu as pltpu

# ----------------------------- op ids -------------------------------------
OP_IDENTITY = 0
OP_SEPCONV3 = 1
OP_AVGPOOL3 = 2
OP_MAXPOOL3 = 3
OP_CONV1 = 4


# ----------------------------- arch parsing --------------------------------
def _parse_arch(arch, nodes):
    node_cfg = []
    used = [0] * (nodes + 2)
    for i in range(nodes):
        x_id, x_op, y_id, y_op = arch[4 * i: 4 * i + 4]
        used[x_id] += 1
        used[y_id] += 1
        node_cfg.append((x_id, x_op, y_id, y_op))
    concat = [i for i, u in enumerate(used) if u == 0]
    return node_cfg, concat


# ----------------------------- params --------------------------------------
def _fold(key, *tags):
    for t in tags:
        key = jax.random.fold_in(key, t)
    return key


def _bn_fold(key, c):
    kg, kb = jax.random.split(key)
    gamma = jax.random.normal(kg, (c,), jnp.float32) * 0.1 + 1.0
    beta = jax.random.normal(kb, (c,), jnp.float32) * 0.1
    running_mean = jnp.zeros((c,), jnp.float32)
    running_var = jnp.ones((c,), jnp.float32)
    scale = gamma / jnp.sqrt(running_var + 1e-5)
    bias = beta - running_mean * scale
    return scale, bias


def _op_params(key, op, channels):
    if op == OP_SEPCONV3:
        k1, k2, k3 = jax.random.split(key, 3)
        dw = jax.random.normal(k1, (9, channels), jnp.float32) * 0.2
        pw = jax.random.normal(k2, (channels, channels), jnp.float32) * 0.2
        # Fold depthwise into pointwise: Wf[k*C + c, c'] = dw[k, c] * pw[c, c']
        wf = (dw[:, :, None] * pw[None, :, :]).reshape(9 * channels, channels)
        s, b = _bn_fold(k3, channels)
        return dict(wf=wf, scale=s, bias=b)
    if op == OP_CONV1:
        k1, k2 = jax.random.split(key)
        w = jax.random.normal(k1, (channels, channels), jnp.float32) * 0.2
        s, b = _bn_fold(k2, channels)
        return dict(w=w, scale=s, bias=b)
    return {}


def build_params(arch, nodes, channels, key):
    """Weight-shared params: selection depends on (node, branch, op, input_id)."""
    node_cfg, _ = _parse_arch(arch, nodes)
    params = {}
    for i, (x_id, x_op, y_id, y_op) in enumerate(node_cfg):
        params[(i, "x")] = _op_params(_fold(key, i, 0, x_op, x_id), x_op, channels)
        params[(i, "y")] = _op_params(_fold(key, i, 1, y_op, y_id), y_op, channels)
    # final WSReLUConvBN: one 1x1 weight per possible input index (nodes + 2)
    params["final_w"] = [
        jax.random.normal(_fold(key, 1000 + i), (channels, channels), jnp.float32) * 0.2
        for i in range(nodes + 2)
    ]
    params["final_scale"], params["final_bias"] = _bn_fold(_fold(key, 2000), channels)
    return params


# ----------------------------- helpers --------------------------------------
def _block_diag(w_cc, W):
    # (C, C) -> (W*C, W*C): W copies of w_cc on the diagonal so a 1x1 conv can
    # be applied directly in the lane-packed (rows, W*C) layout (no relayout).
    return jnp.kron(jnp.eye(W, dtype=w_cc.dtype), w_cc)


def _batch_per_step(batch):
    """Single-TC chips (v5e/v6e): fold the whole batch into one grid step.
    Multi-TC chips (v7x / megacore v4, v5p) or unknown: keep grid=(N,) parallel."""
    try:
        kind = jax.devices()[0].device_kind.lower()
    except Exception:
        kind = ""
    single_tc = any(t in kind for t in ("v5 lite", "v5e", "v6 lite", "v6e"))
    return batch if single_tc else 1


# ----------------------------- fused cell kernel ----------------------------
def build_fused_cell(arch, nodes, N, H, W, C, params):
    node_cfg, concat = _parse_arch(arch, nodes)
    WC = W * C
    B_step = _batch_per_step(N)
    if N % B_step:
        B_step = 1
    BH = B_step * H
    n_steps = N // B_step
    n_cat = len(concat)

    # ---- pack every matmul weight into ONE bf16 slab (rows, WC) and every
    #      folded-BN scale/bias into ONE f32 slab (rows, WC), static offsets.
    w_blocks, sb_rows = [], []
    w_off, sb_off = {}, {}
    row, srow = 0, 0

    def _add_w(block):
        nonlocal row
        w_blocks.append(block)
        off = row
        row += block.shape[0]
        return off

    def _add_sb(scale_c, bias_c):
        nonlocal srow
        sb_rows.append(jnp.tile(scale_c, W)[None, :])   # lane w*C + c -> scale[c]
        sb_rows.append(jnp.tile(bias_c, W)[None, :])
        off = srow
        srow += 2
        return off

    for i, (x_id, x_op, y_id, y_op) in enumerate(node_cfg):
        for branch, op in (("x", x_op), ("y", y_op)):
            p = params[(i, branch)]
            if op == OP_SEPCONV3:
                blocks = [_block_diag(p["wf"][k * C:(k + 1) * C, :], W) for k in range(9)]
                w_off[(i, branch)] = _add_w(jnp.concatenate(blocks, axis=0))   # (9*WC, WC)
                sb_off[(i, branch)] = _add_sb(p["scale"], p["bias"])
            elif op == OP_CONV1:
                w_off[(i, branch)] = _add_w(_block_diag(p["w"], W))            # (WC, WC)
                sb_off[(i, branch)] = _add_sb(p["scale"], p["bias"])
    final_off = _add_w(jnp.concatenate(
        [_block_diag(params["final_w"][j], W) for j in concat], axis=0))       # (n_cat*WC, WC)
    final_sb = _add_sb(params["final_scale"], params["final_bias"])

    w_slab = jnp.concatenate(w_blocks, axis=0).astype(jnp.bfloat16)
    sb_slab = jnp.concatenate(sb_rows, axis=0).astype(jnp.float32)

    # ------------------------------ kernel ----------------------------------
    def kernel(s0_ref, s1_ref, w_ref, sb_ref, out_ref):
        # Border masks, hoisted once (iota + compare), reused by every tap.
        row_id = jax.lax.broadcasted_iota(jnp.int32, (BH, WC), 0)
        lane_id = jax.lax.broadcasted_iota(jnp.int32, (BH, WC), 1)
        if (H & (H - 1)) == 0:
            h_in = jnp.bitwise_and(row_id, H - 1)
        else:
            h_in = row_id % H
        top = h_in == 0                 # row h == 0        (invalid for dy = -1)
        bot = h_in == H - 1             # row h == H-1      (invalid for dy = +1)
        left = lane_id < C              # col w == 0        (invalid for dx = -1)
        right = lane_id >= WC - C       # col w == W-1      (invalid for dx = +1)

        def shift_tap(x, dy, dx, pad_val):
            # tap[r, w*C + c] = x[r + dy, (w + dx)*C + c] inside the image,
            # else pad_val.  Rolls run on the XLU; masks on the VPU.
            r = x
            if dy != 0:
                r = pltpu.roll(r, shift=(-dy) % BH, axis=0)
                r = jnp.where(bot if dy > 0 else top, pad_val, r)
            if dx != 0:
                r = pltpu.roll(r, shift=(-dx * C) % WC, axis=1)
                r = jnp.where(right if dx > 0 else left, pad_val, r)
            return r

        def bn(y, sb):
            return y * sb_ref[sb:sb + 1, :] + sb_ref[sb + 1:sb + 2, :]

        def conv1x1(x, woff, sboff):
            xb = jnp.maximum(x, 0.0).astype(jnp.bfloat16)
            y = jnp.dot(xb, w_ref[woff:woff + WC, :],
                        preferred_element_type=jnp.float32)
            return bn(y, sboff)

        def sepconv3x3(x, woff, sboff):
            # ReLU -> 9 shifted taps (bf16, in registers) -> one matmul -> BN.
            xr = jnp.maximum(x, 0.0)
            taps = [shift_tap(xr, dy, dx, 0.0).astype(jnp.bfloat16)
                    for dy in (-1, 0, 1) for dx in (-1, 0, 1)]
            col = jnp.concatenate(taps, axis=1)            # (BH, 9*WC), lane-aligned
            y = jnp.dot(col, w_ref[woff:woff + 9 * WC, :],
                        preferred_element_type=jnp.float32)
            return bn(y, sboff)

        def pool3x3(x, mode):
            pad = -jnp.inf if mode == "max" else 0.0
            r = x
            for dy in (-1, 0, 1):
                for dx in (-1, 0, 1):
                    if dy == 0 and dx == 0:
                        continue
                    t = shift_tap(x, dy, dx, pad)
                    r = jnp.maximum(r, t) if mode == "max" else r + t
            return r if mode == "max" else r * (1.0 / 9.0)   # count_include_pad=True

        def apply_op(op, x, key):
            if op == OP_IDENTITY:
                return x
            if op == OP_SEPCONV3:
                return sepconv3x3(x, w_off[key], sb_off[key])
            if op == OP_CONV1:
                return conv1x1(x, w_off[key], sb_off[key])
            if op == OP_AVGPOOL3:
                return pool3x3(x, "avg")
            if op == OP_MAXPOOL3:
                return pool3x3(x, "max")
            raise ValueError(f"unknown op {op}")

        # --- node loop (fully unrolled at trace time; states stay on-chip) ---
        states = [s0_ref[...], s1_ref[...]]
        for i, (x_id, x_op, y_id, y_op) in enumerate(node_cfg):
            xo = apply_op(x_op, states[x_id], (i, "x"))
            yo = apply_op(y_op, states[y_id], (i, "y"))
            states.append(xo + yo)                 # branch add fused in-kernel

        # --- final WSReLUConvBN as ONE matmul over the unused states ---------
        fcol = jnp.concatenate(
            [jnp.maximum(states[j], 0.0).astype(jnp.bfloat16) for j in concat],
            axis=1)                                # (BH, n_cat*WC)
        out = jnp.dot(fcol, w_ref[final_off:final_off + n_cat * WC, :],
                      preferred_element_type=jnp.float32)
        out_ref[...] = bn(out, final_sb)           # full-lane (BH, 256) store

    state_spec = pl.BlockSpec((BH, WC), lambda n: (n, 0))
    call = pl.pallas_call(
        kernel,
        out_shape=jax.ShapeDtypeStruct((N * H, WC), jnp.float32),
        grid=(n_steps,),
        in_specs=[state_spec, state_spec,
                  pl.BlockSpec(w_slab.shape, lambda n: (0, 0)),
                  pl.BlockSpec(sb_slab.shape, lambda n: (0, 0))],
        out_specs=pl.BlockSpec((BH, WC), lambda n: (n, 0)),
        compiler_params=pltpu.CompilerParams(
            dimension_semantics=("parallel",)),
    )

    @jax.jit
    def run(s0_nchw, s1_nchw):
        def pack(x):            # NCHW -> lane-packed (N*H, W*C)
            return jnp.transpose(x, (0, 2, 3, 1)).reshape(N * H, WC)
        out = call(pack(s0_nchw), pack(s1_nchw), w_slab, sb_slab)
        return jnp.transpose(out.reshape(N, H, W, C), (0, 3, 1, 2))

    return run


# ----------------------------- main -----------------------------------------
if __name__ == "__main__":
    NODES, C, H, W, N = 3, 16, 16, 16, 2

    key = jax.random.PRNGKey(0)
    k0, k1, kp = jax.random.split(key, 3)
    s0_nchw = jax.random.normal(k0, (N, C, H, W), jnp.float32)
    s1_nchw = jax.random.normal(k1, (N, C, H, W), jnp.float32)

    # arch = [x_id, x_op, y_id, y_op] per node (static, as in the search code)
    arch = [0, OP_SEPCONV3, 1, OP_CONV1,
            2, OP_AVGPOOL3, 0, OP_IDENTITY,
            1, OP_MAXPOOL3, 2, OP_CONV1]

    params = build_params(arch, NODES, C, kp)
    cell = build_fused_cell(arch, NODES, N, H, W, C, params)

    out_nchw = cell(s0_nchw, s1_nchw)
    jax.block_until_ready(out_nchw)

    assert out_nchw.shape == (N, C, H, W)
    assert bool(jnp.all(jnp.isfinite(out_nchw)))
    print("KERNEL_OK")
</pallas_src>

<mosaic_0001>
module attributes {stable_mosaic.version = 11 : i64} {
  func.func @kernel(%arg0: i32, %arg1: memref<16x256xf32, #tpu.memory_space<vmem>>, %arg2: memref<16x256xf32, #tpu.memory_space<vmem>>, %arg3: memref<3328x256xbf16, #tpu.memory_space<vmem>>, %arg4: memref<8x256xf32, #tpu.memory_space<vmem>>, %arg5: memref<16x256xf32, #tpu.memory_space<vmem>>) attributes {dimension_semantics = [#tpu.dimension_semantics<parallel>], iteration_bounds = array<i64: 2>, scalar_prefetch = 0 : i64, scratch_operands = 0 : i64, tpu.core_type = #tpu.core_type<tc>, window_params = [{transform_indices = @transform_0, window_bounds = array<i64: 16, 256>}, {transform_indices = @transform_1, window_bounds = array<i64: 16, 256>}, {pipeline_mode = #tpu.pipeline_mode<synchronous>, transform_indices = @transform_2, window_bounds = array<i64: 3328, 256>}, {pipeline_mode = #tpu.pipeline_mode<synchronous>, transform_indices = @transform_3, window_bounds = array<i64: 8, 256>}, {transform_indices = @transform_4, window_bounds = array<i64: 16, 256>}]} {
    %0 = tpu.iota {dimensions = array<i32: 0>} : vector<16x256xi32>
    %1 = tpu.iota {dimensions = array<i32: 1>} : vector<16x256xi32>
    %c15_i32 = arith.constant 15 : i32
    %2 = vector.broadcast %c15_i32 : i32 to vector<16x256xi32>
    %3 = arith.andi %0, %2 : vector<16x256xi32>
    %c0_i32 = arith.constant 0 : i32
    %4 = vector.broadcast %c0_i32 : i32 to vector<16x256xi32>
    %5 = arith.cmpi eq, %3, %4 : vector<16x256xi32>
    %c15_i32_0 = arith.constant 15 : i32
    %6 = vector.broadcast %c15_i32_0 : i32 to vector<16x256xi32>
    %7 = arith.cmpi eq, %3, %6 : vector<16x256xi32>
    %c16_i32 = arith.constant 16 : i32
    %8 = vector.broadcast %c16_i32 : i32 to vector<16x256xi32>
    %9 = arith.cmpi slt, %1, %8 : vector<16x256xi32>
    %c240_i32 = arith.constant 240 : i32
    %10 = vector.broadcast %c240_i32 : i32 to vector<16x256xi32>
    %11 = arith.cmpi sge, %1, %10 : vector<16x256xi32>
    %c0 = arith.constant 0 : index
    %c0_1 = arith.constant 0 : index
    %12 = vector.load %arg1[%c0, %c0_1] : memref<16x256xf32, #tpu.memory_space<vmem>>, vector<16x256xf32>
    %c0_2 = arith.constant 0 : index
    %c0_3 = arith.constant 0 : index
    %13 = vector.load %arg2[%c0_2, %c0_3] : memref<16x256xf32, #tpu.memory_space<vmem>>, vector<16x256xf32>
    %cst = arith.constant 0.000000e+00 : f32
    %14 = vector.broadcast %cst : f32 to vector<16x256xf32>
    %15 = arith.maximumf %12, %14 : vector<16x256xf32>
    %c1_i32 = arith.constant 1 : i32
    %16 = tpu.dynamic_rotate %15 by %c1_i32 dim 0 : vector<16x256xf32>, i32 -> vector<16x256xf32>
    %cst_4 = arith.constant 0.000000e+00 : f32
    %17 = vector.broadcast %cst_4 : f32 to vector<16x256xf32>
    %18 = arith.select %5, %17, %16 : vector<16x256xi1>, vector<16x256xf32>
    %c16_i32_5 = arith.constant 16 : i32
    %19 = tpu.dynamic_rotate %18 by %c16_i32_5 dim 1 : vector<16x256xf32>, i32 -> vector<16x256xf32>
    %cst_6 = arith.constant 0.000000e+00 : f32
    %20 = vector.broadcast %cst_6 : f32 to vector<16x256xf32>
    %21 = arith.select %9, %20, %19 : vector<16x256xi1>, vector<16x256xf32>
    %22 = arith.truncf %21 : vector<16x256xf32> to vector<16x256xbf16>
    %c1_i32_7 = arith.constant 1 : i32
    %23 = tpu.dynamic_rotate %15 by %c1_i32_7 dim 0 : vector<16x256xf32>, i32 -> vector<16x256xf32>
    %cst_8 = arith.constant 0.000000e+00 : f32
    %24 = vector.broadcast %cst_8 : f32 to vector<16x256xf32>
    %25 = arith.select %5, %24, %23 : vector<16x256xi1>, vector<16x256xf32>
    %26 = arith.truncf %25 : vector<16x256xf32> to vector<16x256xbf16>
    %c1_i32_9 = arith.constant 1 : i32
    %27 = tpu.dynamic_rotate %15 by %c1_i32_9 dim 0 : vector<16x256xf32>, i32 -> vector<16x256xf32>
    %cst_10 = arith.constant 0.000000e+00 : f32
    %28 = vector.broadcast %cst_10 : f32 to vector<16x256xf32>
    %29 = arith.select %5, %28, %27 : vector<16x256xi1>, vector<16x256xf32>
    %c240_i32_11 = arith.constant 240 : i32
    %30 = tpu.dynamic_rotate %29 by %c240_i32_11 dim 1 : vector<16x256xf32>, i32 -> vector<16x256xf32>
    %cst_12 = arith.constant 0.000000e+00 : f32
    %31 = vector.broadcast %cst_12 : f32 to vector<16x256xf32>
    %32 = arith.select %11, %31, %30 : vector<16x256xi1>, vector<16x256xf32>
    %33 = arith.truncf %32 : vector<16x256xf32> to vector<16x256xbf16>
    %c16_i32_13 = arith.constant 16 : i32
    %34 = tpu.dynamic_rotate %15 by %c16_i32_13 dim 1 : vector<16x256xf32>, i32 -> vector<16x256xf32>
    %cst_14 = arith.constant 0.000000e+00 : f32
    %35 = vector.broadcast %cst_14 : f32 to vector<16x256xf32>
    %36 = arith.select %9, %35, %34 : vector<16x256xi1>, vector<16x256xf32>
    %37 = arith.truncf %36 : vector<16x256xf32> to vector<16x256xbf16>
    %38 = arith.truncf %15 : vector<16x256xf32> to vector<16x256xbf16>
    %c240_i32_15 = arith.constant 240 : i32
    %39 = tpu.dynamic_rotate %15 by %c240_i32_15 dim 1 : vector<16x256xf32>, i32 -> vector<16x256xf32>
    %cst_16 = arith.constant 0.000000e+00 : f32
    %40 = vector.broadcast %cst_16 : f32 to vector<16x256xf32>
    %41 = arith.select %11, %40, %39 : vector<16x256xi1>, vector<16x256xf32>
    %42 = arith.truncf %41 : vector<16x256xf32> to vector<16x256xbf16>
    %c15_i32_17 = arith.constant 15 : i32
    %43 = tpu.dynamic_rotate %15 by %c15_i32_17 dim 0 : vector<16x256xf32>, i32 -> vector<16x256xf32>
    %cst_18 = arith.constant 0.000000e+00 : f32
    %44 = vector.broadcast %cst_18 : f32 to vector<16x256xf32>
    %45 = arith.select %7, %44, %43 : vector<16x256xi1>, vector<16x256xf32>
    %c16_i32_19 = arith.constant 16 : i32
    %46 = tpu.dynamic_rotate %45 by %c16_i32_19 dim 1 : vector<16x256xf32>, i32 -> vector<16x256xf32>
    %cst_20 = arith.constant 0.000000e+00 : f32
    %47 = vector.broadcast %cst_20 : f32 to vector<16x256xf32>
    %48 = arith.select %9, %47, %46 : vector<16x256xi1>, vector<16x256xf32>
    %49 = arith.truncf %48 : vector<16x256xf32> to vector<16x256xbf16>
    %c15_i32_21 = arith.constant 15 : i32
    %50 = tpu.dynamic_rotate %15 by %c15_i32_21 dim 0 : vector<16x256xf32>, i32 -> vector<16x256xf32>
    %cst_22 = arith.constant 0.000000e+00 : f32
    %51 = vector.broadcast %cst_22 : f32 to vector<16x256xf32>
    %52 = arith.select %7, %51, %50 : vector<16x256xi1>, vector<16x256xf32>
    %53 = arith.truncf %52 : vector<16x256xf32> to vector<16x256xbf16>
    %c15_i32_23 = arith.constant 15 : i32
    %54 = tpu.dynamic_rotate %15 by %c15_i32_23 dim 0 : vector<16x256xf32>, i32 -> vector<16x256xf32>
    %cst_24 = arith.constant 0.000000e+00 : f32
    %55 = vector.broadcast %cst_24 : f32 to vector<16x256xf32>
    %56 = arith.select %7, %55, %54 : vector<16x256xi1>, vector<16x256xf32>
    %c240_i32_25 = arith.constant 240 : i32
    %57 = tpu.dynamic_rotate %56 by %c240_i32_25 dim 1 : vector<16x256xf32>, i32 -> vector<16x256xf32>
    %cst_26 = arith.constant 0.000000e+00 : f32
    %58 = vector.broadcast %cst_26 : f32 to vector<16x256xf32>
    %59 = arith.select %11, %58, %57 : vector<16x256xi1>, vector<16x256xf32>
    %60 = arith.truncf %59 : vector<16x256xf32> to vector<16x256xbf16>
    %61 = tpu.concatenate %22, %26, %33, %37, %38, %42, %49, %53, %60 in 1 : vector<16x256xbf16>, vector<16x256xbf16>, vector<16x256xbf16>, vector<16x256xbf16>, vector<16x256xbf16>, vector<16x256xbf16>, vector<16x256xbf16>, vector<16x256xbf16>, vector<16x256xbf16> -> vector<16x2304xbf16>
    %c0_27 = arith.constant 0 : index
    %c0_28 = arith.constant 0 : index
    %62 = vector.load %arg3[%c0_27, %c0_28] : memref<3328x256xbf16, #tpu.memory_space<vmem>>, vector<2304x256xbf16>
    %cst_29 = arith.constant dense<0.000000e+00> : vector<16x256xf32>
    %63 = tpu.matmul %61, %62, %cst_29 {dimension_numbers = #tpu.dot_dimension_numbers<[1], [0], [0], [1], [0, 0, 1, 1], [], []>} : vector<16x2304xbf16>, vector<2304x256xbf16>, vector<16x256xf32> -> vector<16x256xf32>
    %c0_30 = arith.constant 0 : index
    %c0_31 = arith.constant 0 : index
    %64 = vector.load %arg4[%c0_30, %c0_31] : memref<8x256xf32, #tpu.memory_space<vmem>>, vector<1x256xf32>
    %65 = vector.broadcast %64 : vector<1x256xf32> to vector<16x256xf32>
    %66 = arith.mulf %63, %65 : vector<16x256xf32>
    %c1 = arith.constant 1 : index
    %c0_32 = arith.constant 0 : index
    %67 = vector.load %arg4[%c1, %c0_32] : memref<8x256xf32, #tpu.memory_space<vmem>>, vector<1x256xf32>
    %68 = vector.broadcast %67 : vector<1x256xf32> to vector<16x256xf32>
    %69 = arith.addf %66, %68 : vector<16x256xf32>
    %cst_33 = arith.constant 0.000000e+00 : f32
    %70 = vector.broadcast %cst_33 : f32 to vector<16x256xf32>
    %71 = arith.maximumf %13, %70 : vector<16x256xf32>
    %72 = arith.truncf %71 : vector<16x256xf32> to vector<16x256xbf16>
    %c2304 = arith.constant 2304 : index
    %c0_34 = arith.constant 0 : index
    %73 = vector.load %arg3[%c2304, %c0_34] : memref<3328x256xbf16, #tpu.memory_space<vmem>>, vector<256x256xbf16>
    %cst_35 = arith.constant dense<0.000000e+00> : vector<16x256xf32>
    %74 = tpu.matmul %72, %73, %cst_35 {dimension_numbers = #tpu.dot_dimension_numbers<[1], [0], [0], [1], [0, 0, 1, 1], [], []>} : vector<16x256xbf16>, vector<256x256xbf16>, vector<16x256xf32> -> vector<16x256xf32>
    %c2 = arith.constant 2 : index
    %c0_36 = arith.constant 0 : index
    %75 = vector.load %arg4[%c2, %c0_36] : memref<8x256xf32, #tpu.memory_space<vmem>>, vector<1x256xf32>
    %76 = vector.broadcast %75 : vector<1x256xf32> to vector<16x256xf32>
    %77 = arith.mulf %74, %76 : vector<16x256xf32>
    %c3 = arith.constant 3 : index
    %c0_37 = arith.constant 0 : index
    %78 = vector.load %arg4[%c3, %c0_37] : memref<8x256xf32, #tpu.memory_space<vmem>>, vector<1x256xf32>
    %79 = vector.broadcast %78 : vector<1x256xf32> to vector<16x256xf32>
    %80 = arith.addf %77, %79 : vector<16x256xf32>
    %81 = arith.addf %69, %80 : vector<16x256xf32>
    %c1_i32_38 = arith.constant 1 : i32
    %82 = tpu.dynamic_rotate %81 by %c1_i32_38 dim 0 : vector<16x256xf32>, i32 -> vector<16x256xf32>
    %cst_39 = arith.constant 0.000000e+00 : f32
    %83 = vector.broadcast %cst_39 : f32 to vector<16x256xf32>
    %84 = arith.select %5, %83, %82 : vector<16x256xi1>, vector<16x256xf32>
    %c16_i32_40 = arith.constant 16 : i32
    %85 = tpu.dynamic_rotate %84 by %c16_i32_40 dim 1 : vector<16x256xf32>, i32 -> vector<16x256xf32>
    %cst_41 = arith.constant 0.000000e+00 : f32
    %86 = vector.broadcast %cst_41 : f32 to vector<16x256xf32>
    %87 = arith.select %9, %86, %85 : vector<16x256xi1>, vector<16x256xf32>
    %88 = arith.addf %81, %87 : vector<16x256xf32>
    %c1_i32_42 = arith.constant 1 : i32
    %89 = tpu.dynamic_rotate %81 by %c1_i32_42 dim 0 : vector<16x256xf32>, i32 -> vector<16x256xf32>
    %cst_43 = arith.constant 0.000000e+00 : f32
    %90 = vector.broadcast %cst_43 : f32 to vector<16x256xf32>
    %91 = arith.select %5, %90, %89 : vector<16x256xi1>, vector<16x256xf32>
    %92 = arith.addf %88, %91 : vector<16x256xf32>
    %c1_i32_44 = arith.constant 1 : i32
    %93 = tpu.dynamic_rotate %81 by %c1_i32_44 dim 0 : vector<16x256xf32>, i32 -> vector<16x256xf32>
    %cst_45 = arith.constant 0.000000e+00 : f32
    %94 = vector.broadcast %cst_45 : f32 to vector<16x256xf32>
    %95 = arith.select %5, %94, %93 : vector<16x256xi1>, vector<16x256xf32>
    %c240_i32_46 = arith.constant 240 : i32
    %96 = tpu.dynamic_rotate %95 by %c240_i32_46 dim 1 : vector<16x256xf32>, i32 -> vector<16x256xf32>
    %cst_47 = arith.constant 0.000000e+00 : f32
    %97 = vector.broadcast %cst_47 : f32 to vector<16x256xf32>
    %98 = arith.select %11, %97, %96 : vector<16x256xi1>, vector<16x256xf32>
    %99 = arith.addf %92, %98 : vector<16x256xf32>
    %c16_i32_48 = arith.constant 16 : i32
    %100 = tpu.dynamic_rotate %81 by %c16_i32_48 dim 1 : vector<16x256xf32>, i32 -> vector<16x256xf32>
    %cst_49 = arith.constant 0.000000e+00 : f32
    %101 = vector.broadcast %cst_49 : f32 to vector<16x256xf32>
    %102 = arith.select %9, %101, %100 : vector<16x256xi1>, vector<16x256xf32>
    %103 = arith.addf %99, %102 : vector<16x256xf32>
    %c240_i32_50 = arith.constant 240 : i32
    %104 = tpu.dynamic_rotate %81 by %c240_i32_50 dim 1 : vector<16x256xf32>, i32 -> vector<16x256xf32>
    %cst_51 = arith.constant 0.000000e+00 : f32
    %105 = vector.broadcast %cst_51 : f32 to vector<16x256xf32>
    %106 = arith.select %11, %105, %104 : vector<16x256xi1>, vector<16x256xf32>
    %107 = arith.addf %103, %106 : vector<16x256xf32>
    %c15_i32_52 = arith.constant 15 : i32
    %108 = tpu.dynamic_rotate %81 by %c15_i32_52 dim 0 : vector<16x256xf32>, i32 -> vector<16x256xf32>
    %cst_53 = arith.constant 0.000000e+00 : f32
    %109 = vector.broadcast %cst_53 : f32 to vector<16x256xf32>
    %110 = arith.select %7, %109, %108 : vector<16x256xi1>, vector<16x256xf32>
    %c16_i32_54 = arith.constant 16 : i32
    %111 = tpu.dynamic_rotate %110 by %c16_i32_54 dim 1 : vector<16x256xf32>, i32 -> vector<16x256xf32>
    %cst_55 = arith.constant 0.000000e+00 : f32
    %112 = vector.broadcast %cst_55 : f32 to vector<16x256xf32>
    %113 = arith.select %9, %112, %111 : vector<16x256xi1>, vector<16x256xf32>
    %114 = arith.addf %107, %113 : vector<16x256xf32>
    %c15_i32_56 = arith.constant 15 : i32
    %115 = tpu.dynamic_rotate %81 by %c15_i32_56 dim 0 : vector<16x256xf32>, i32 -> vector<16x256xf32>
    %cst_57 = arith.constant 0.000000e+00 : f32
    %116 = vector.broadcast %cst_57 : f32 to vector<16x256xf32>
    %117 = arith.select %7, %116, %115 : vector<16x256xi1>, vector<16x256xf32>
    %118 = arith.addf %114, %117 : vector<16x256xf32>
    %c15_i32_58 = arith.constant 15 : i32
    %119 = tpu.dynamic_rotate %81 by %c15_i32_58 dim 0 : vector<16x256xf32>, i32 -> vector<16x256xf32>
    %cst_59 = arith.constant 0.000000e+00 : f32
    %120 = vector.broadcast %cst_59 : f32 to vector<16x256xf32>
    %121 = arith.select %7, %120, %119 : vector<16x256xi1>, vector<16x256xf32>
    %c240_i32_60 = arith.constant 240 : i32
    %122 = tpu.dynamic_rotate %121 by %c240_i32_60 dim 1 : vector<16x256xf32>, i32 -> vector<16x256xf32>
    %cst_61 = arith.constant 0.000000e+00 : f32
    %123 = vector.broadcast %cst_61 : f32 to vector<16x256xf32>
    %124 = arith.select %11, %123, %122 : vector<16x256xi1>, vector<16x256xf32>
    %125 = arith.addf %118, %124 : vector<16x256xf32>
    %cst_62 = arith.constant 0.111111112 : f32
    %126 = vector.broadcast %cst_62 : f32 to vector<16x256xf32>
    %127 = arith.mulf %125, %126 : vector<16x256xf32>
    %128 = arith.addf %127, %12 : vector<16x256xf32>
    %c1_i32_63 = arith.constant 1 : i32
    %129 = tpu.dynamic_rotate %13 by %c1_i32_63 dim 0 : vector<16x256xf32>, i32 -> vector<16x256xf32>
    %cst_64 = arith.constant 0xFF800000 : f32
    %130 = vector.broadcast %cst_64 : f32 to vector<16x256xf32>
    %131 = arith.select %5, %130, %129 : vector<16x256xi1>, vector<16x256xf32>
    %c16_i32_65 = arith.constant 16 : i32
    %132 = tpu.dynamic_rotate %131 by %c16_i32_65 dim 1 : vector<16x256xf32>, i32 -> vector<16x256xf32>
    %cst_66 = arith.constant 0xFF800000 : f32
    %133 = vector.broadcast %cst_66 : f32 to vector<16x256xf32>
    %134 = arith.select %9, %133, %132 : vector<16x256xi1>, vector<16x256xf32>
    %135 = arith.maximumf %13, %134 : vector<16x256xf32>
    %c1_i32_67 = arith.constant 1 : i32
    %136 = tpu.dynamic_rotate %13 by %c1_i32_67 dim 0 : vector<16x256xf32>, i32 -> vector<16x256xf32>
    %cst_68 = arith.constant 0xFF800000 : f32
    %137 = vector.broadcast %cst_68 : f32 to vector<16x256xf32>
    %138 = arith.select %5, %137, %136 : vector<16x256xi1>, vector<16x256xf32>
    %139 = arith.maximumf %135, %138 : vector<16x256xf32>
    %c1_i32_69 = arith.constant 1 : i32
    %140 = tpu.dynamic_rotate %13 by %c1_i32_69 dim 0 : vector<16x256xf32>, i32 -> vector<16x256xf32>
    %cst_70 = arith.constant 0xFF800000 : f32
    %141 = vector.broadcast %cst_70 : f32 to vector<16x256xf32>
    %142 = arith.select %5, %141, %140 : vector<16x256xi1>, vector<16x256xf32>
    %c240_i32_71 = arith.constant 240 : i32
    %143 = tpu.dynamic_rotate %142 by %c240_i32_71 dim 1 : vector<16x256xf32>, i32 -> vector<16x256xf32>
    %cst_72 = arith.constant 0xFF800000 : f32
    %144 = vector.broadcast %cst_72 : f32 to vector<16x256xf32>
    %145 = arith.select %11, %144, %143 : vector<16x256xi1>, vector<16x256xf32>
    %146 = arith.maximumf %139, %145 : vector<16x256xf32>
    %c16_i32_73 = arith.constant 16 : i32
    %147 = tpu.dynamic_rotate %13 by %c16_i32_73 dim 1 : vector<16x256xf32>, i32 -> vector<16x256xf32>
    %cst_74 = arith.constant 0xFF800000 : f32
    %148 = vector.broadcast %cst_74 : f32 to vector<16x256xf32>
    %149 = arith.select %9, %148, %147 : vector<16x256xi1>, vector<16x256xf32>
    %150 = arith.maximumf %146, %149 : vector<16x256xf32>
    %c240_i32_75 = arith.constant 240 : i32
    %151 = tpu.dynamic_rotate %13 by %c240_i32_75 dim 1 : vector<16x256xf32>, i32 -> vector<16x256xf32>
    %cst_76 = arith.constant 0xFF800000 : f32
    %152 = vector.broadcast %cst_76 : f32 to vector<16x256xf32>
    %153 = arith.select %11, %152, %151 : vector<16x256xi1>, vector<16x256xf32>
    %154 = arith.maximumf %150, %153 : vector<16x256xf32>
    %c15_i32_77 = arith.constant 15 : i32
    %155 = tpu.dynamic_rotate %13 by %c15_i32_77 dim 0 : vector<16x256xf32>, i32 -> vector<16x256xf32>
    %cst_78 = arith.constant 0xFF800000 : f32
    %156 = vector.broadcast %cst_78 : f32 to vector<16x256xf32>
    %157 = arith.select %7, %156, %155 : vector<16x256xi1>, vector<16x256xf32>
    %c16_i32_79 = arith.constant 16 : i32
    %158 = tpu.dynamic_rotate %157 by %c16_i32_79 dim 1 : vector<16x256xf32>, i32 -> vector<16x256xf32>
    %cst_80 = arith.constant 0xFF800000 : f32
    %159 = vector.broadcast %cst_80 : f32 to vector<16x256xf32>
    %160 = arith.select %9, %159, %158 : vector<16x256xi1>, vector<16x256xf32>
    %161 = arith.maximumf %154, %160 : vector<16x256xf32>
    %c15_i32_81 = arith.constant 15 : i32
    %162 = tpu.dynamic_rotate %13 by %c15_i32_81 dim 0 : vector<16x256xf32>, i32 -> vector<16x256xf32>
    %cst_82 = arith.constant 0xFF800000 : f32
    %163 = vector.broadcast %cst_82 : f32 to vector<16x256xf32>
    %164 = arith.select %7, %163, %162 : vector<16x256xi1>, vector<16x256xf32>
    %165 = arith.maximumf %161, %164 : vector<16x256xf32>
    %c15_i32_83 = arith.constant 15 : i32
    %166 = tpu.dynamic_rotate %13 by %c15_i32_83 dim 0 : vector<16x256xf32>, i32 -> vector<16x256xf32>
    %cst_84 = arith.constant 0xFF800000 : f32
    %167 = vector.broadcast %cst_84 : f32 to vector<16x256xf32>
    %168 = arith.select %7, %167, %166 : vector<16x256xi1>, vector<16x256xf32>
    %c240_i32_85 = arith.constant 240 : i32
    %169 = tpu.dynamic_rotate %168 by %c240_i32_85 dim 1 : vector<16x256xf32>, i32 -> vector<16x256xf32>
    %cst_86 = arith.constant 0xFF800000 : f32
    %170 = vector.broadcast %cst_86 : f32 to vector<16x256xf32>
    %171 = arith.select %11, %170, %169 : vector<16x256xi1>, vector<16x256xf32>
    %172 = arith.maximumf %165, %171 : vector<16x256xf32>
    %cst_87 = arith.constant 0.000000e+00 : f32
    %173 = vector.broadcast %cst_87 : f32 to vector<16x256xf32>
    %174 = arith.maximumf %81, %173 : vector<16x256xf32>
    %175 = arith.truncf %174 : vector<16x256xf32> to vector<16x256xbf16>
    %c2560 = arith.constant 2560 : index
    %c0_88 = arith.constant 0 : index
    %176 = vector.load %arg3[%c2560, %c0_88] : memref<3328x256xbf16, #tpu.memory_space<vmem>>, vector<256x256xbf16>
    %cst_89 = arith.constant dense<0.000000e+00> : vector<16x256xf32>
    %177 = tpu.matmul %175, %176, %cst_89 {dimension_numbers = #tpu.dot_dimension_numbers<[1], [0], [0], [1], [0, 0, 1, 1], [], []>} : vector<16x256xbf16>, vector<256x256xbf16>, vector<16x256xf32> -> vector<16x256xf32>
    %c4 = arith.constant 4 : index
    %c0_90 = arith.constant 0 : index
    %178 = vector.load %arg4[%c4, %c0_90] : memref<8x256xf32, #tpu.memory_space<vmem>>, vector<1x256xf32>
    %179 = vector.broadcast %178 : vector<1x256xf32> to vector<16x256xf32>
    %180 = arith.mulf %177, %179 : vector<16x256xf32>
    %c5 = arith.constant 5 : index
    %c0_91 = arith.constant 0 : index
    %181 = vector.load %arg4[%c5, %c0_91] : memref<8x256xf32, #tpu.memory_space<vmem>>, vector<1x256xf32>
    %182 = vector.broadcast %181 : vector<1x256xf32> to vector<16x256xf32>
    %183 = arith.addf %180, %182 : vector<16x256xf32>
    %184 = arith.addf %172, %183 : vector<16x256xf32>
    %cst_92 = arith.constant 0.000000e+00 : f32
    %185 = vector.broadcast %cst_92 : f32 to vector<16x256xf32>
    %186 = arith.maximumf %128, %185 : vector<16x256xf32>
    %187 = arith.truncf %186 : vector<16x256xf32> to vector<16x256xbf16>
    %cst_93 = arith.constant 0.000000e+00 : f32
    %188 = vector.broadcast %cst_93 : f32 to vector<16x256xf32>
    %189 = arith.maximumf %184, %188 : vector<16x256xf32>
    %190 = arith.truncf %189 : vector<16x256xf32> to vector<16x256xbf16>
    %191 = tpu.concatenate %187, %190 in 1 : vector<16x256xbf16>, vector<16x256xbf16> -> vector<16x512xbf16>
    %c2816 = arith.constant 2816 : index
    %c0_94 = arith.constant 0 : index
    %192 = vector.load %arg3[%c2816, %c0_94] : memref<3328x256xbf16, #tpu.memory_space<vmem>>, vector<512x256xbf16>
    %cst_95 = arith.constant dense<0.000000e+00> : vector<16x256xf32>
    %193 = tpu.matmul %191, %192, %cst_95 {dimension_numbers = #tpu.dot_dimension_numbers<[1], [0], [0], [1], [0, 0, 1, 1], [], []>} : vector<16x512xbf16>, vector<512x256xbf16>, vector<16x256xf32> -> vector<16x256xf32>
    %c6 = arith.constant 6 : index
    %c0_96 = arith.constant 0 : index
    %194 = vector.load %arg4[%c6, %c0_96] : memref<8x256xf32, #tpu.memory_space<vmem>>, vector<1x256xf32>
    %195 = vector.broadcast %194 : vector<1x256xf32> to vector<16x256xf32>
    %196 = arith.mulf %193, %195 : vector<16x256xf32>
    %c7 = arith.constant 7 : index
    %c0_97 = arith.constant 0 : index
    %197 = vector.load %arg4[%c7, %c0_97] : memref<8x256xf32, #tpu.memory_space<vmem>>, vector<1x256xf32>
    %198 = vector.broadcast %197 : vector<1x256xf32> to vector<16x256xf32>
    %199 = arith.addf %196, %198 : vector<16x256xf32>
    %c0_98 = arith.constant 0 : index
    %c0_99 = arith.constant 0 : index
    %200 = vector.load %arg5[%c0_98, %c0_99] : memref<16x256xf32, #tpu.memory_space<vmem>>, vector<16x256xf32>
    tpu.vector_store %arg5[%c0_98, %c0_99], %199 {strides = array<i32>} : memref<16x256xf32, #tpu.memory_space<vmem>>, vector<16x256xf32>,
    return
  }
  func.func @transform_0(%arg0: i32) -> (i32, i32) {
    %c0_i32 = arith.constant 0 : i32
    %c0_i32_0 = arith.constant 0 : i32
    return %arg0, %c0_i32 : i32, i32
  }
  func.func @transform_1(%arg0: i32) -> (i32, i32) {
    %c0_i32 = arith.constant 0 : i32
    %c0_i32_0 = arith.constant 0 : i32
    return %arg0, %c0_i32 : i32, i32
  }
  func.func @transform_2(%arg0: i32) -> (i32, i32) {
    %c0_i32 = arith.constant 0 : i32
    %c0_i32_0 = arith.constant 0 : i32
    %c0_i32_1 = arith.constant 0 : i32
    return %c0_i32, %c0_i32_0 : i32, i32
  }
  func.func @transform_3(%arg0: i32) -> (i32, i32) {
    %c0_i32 = arith.constant 0 : i32
    %c0_i32_0 = arith.constant 0 : i32
    %c0_i32_1 = arith.constant 0 : i32
    return %c0_i32, %c0_i32_0 : i32, i32
  }
  func.func @transform_4(%arg0: i32) -> (i32, i32) {
    %c0_i32 = arith.constant 0 : i32
    %c0_i32_0 = arith.constant 0 : i32
    return %arg0, %c0_i32 : i32, i32
  }
}

</mosaic_0001>

<bundles_post_ra>
// kernel: run.1
= control target key start
LH: loop header
LB: loop body
LE: loop exit
PB: predicated region body
PF: predicated region fallthrough
CT: control target
= control target key end

     0   :  { %s5271_s15 = smov 0   ;;  %s7400_s0 = inlined_call_operand.vmem [shape: f32[32,256], index: 0, kind: input, shape index: {}]   ;;  %s7401_s1 = inlined_call_operand.vmem [shape: f32[32,256], index: 1, kind: input, shape index: {}]   ;;  %s7402_s2 = inlined_call_operand.vmem [shape: bf16[3328,256], index: 2, kind: input, shape index: {}]   ;;  %s7403_s3 = inlined_call_operand.vmem [shape: f32[8,256], index: 3, kind: input, shape index: {}]   ;;  %s7404_s4 = inlined_call_operand.vmem [shape: f32[32,256], index: 4, kind: output, shape index: {}]  }
   0x1 LB: > { %s4008_s16 = sadd.s32 4294967295, %s5241_s15   ;;  %p4012_p0 = scmp.ge.s32.totalorder %s5241_s15, 1  ;;  %s5241_s15 = sphi %s5271_s15, %s14_s15  }
   0x2   : > { %p176_p1 = scmp.lt.s32.totalorder %s5241_s15, 3 }
   0x4   : > { %p177_p2 = pnand %p4012_p0, %p176_p1 }
   0x5   : > { %s4013_s17 = sshll.u32 (!%p177_p2), %s4008_s16, 1  ;;  %v231_v0 = vlaneseq (!%p177_p2)  ;;  %v4603_v1 = vld [vmem:[%s7402_s2 + $0x204] ss:$8 sps:$4 sm:$0xff] (!%p177_p2)   ;;  %v4605_v2 = vld [vmem:[%s7402_s2 + $0x200] ss:$8 sps:$4 sm:$0xff] (!%p177_p2)   ;;  %s5243_s12 = smov (!%p177_p2), 16  }
   0x6   : > { %180 = sbr.rel (%p177_p2) target bundleno = 1212 (0x4bc), region = 36  ;;  %p211_p3 = scmp.lt.s32.totalorder (!%p177_p2), %s4013_s17, 3  ;;  %2214 = vmatprep.subr.bf16.mxu0 (!%p177_p2), %v4603_v1  ;;  %v4606_v4 = vld [vmem:[%s7402_s2 + $0x214] ss:$8 sps:$4 sm:$0xff] (!%p177_p2)   ;;  %v4608_v5 = vld [vmem:[%s7402_s2 + $0x210] ss:$8 sps:$4 sm:$0xff] (!%p177_p2)  }
   0x7   : > { %v5286_v3 = vshrl.u32 (!%p177_p2), %v231_v0, 7  ;;  %2215 = vmatpush1.bf16.msra.mxu0 (!%p177_p2), %v4605_v2  ;;  %v4609_v6 = vld [vmem:[%s7402_s2 + $0x224] ss:$8 sps:$4 sm:$0xff] (!%p177_p2)   ;;  %v4611_v8 = vld [vmem:[%s7402_s2 + $0x220] ss:$8 sps:$4 sm:$0xff] (!%p177_p2)   ;;  %s5244_s18 = smov (!%p177_p2), 112  }
   0x8   : > { %2216 = vmatprep.subr.bf16.mxu0 (!%p177_p2), %v4606_v4  ;;  %v4612_v16 = vld [vmem:[%s7402_s2 + $0x234] ss:$8 sps:$4 sm:$0xff] (!%p177_p2)   ;;  %v4614_v24 = vld [vmem:[%s7402_s2 + $0x230] ss:$8 sps:$4 sm:$0xff] (!%p177_p2)   ;;  %v4615_v32 = vld [vmem:[%s7402_s2 + $0x244] ss:$8 sps:$4 sm:$0xff] (!%p177_p2)  }
   0x9   : > { %v237_v7 = vand.u32 (!%p177_p2), 15, %v5286_v3  ;;  %vm263_vm1 = vcmp.lt.s32.totalorder (!%p177_p2), %v5286_v3, 1  ;;  %v4617_v35 = vld [vmem:[%s7402_s2 + $0x240] ss:$8 sps:$4 sm:$0xff] (!%p177_p2)   ;;  %v4618_v37 = vld [vmem:[%s7402_s2 + $0x254] ss:$8 sps:$4 sm:$0xff] (!%p177_p2)  }
   0xa   : > { %v4620_v38 = vld [vmem:[%s7402_s2 + $0x250] ss:$8 sps:$4 sm:$0xff] (!%p177_p2)   ;;  %v4621_v39 = vld [vmem:[%s7402_s2 + $0x264] ss:$8 sps:$4 sm:$0xff] (!%p177_p2)   ;;  %v4623_v40 = vld [vmem:[%s7402_s2 + $0x260] ss:$8 sps:$4 sm:$0xff] (!%p177_p2)  }
   0xb   : > { %2217 = vmatpush1.bf16.msra.mxu0 (!%p177_p2), %v4608_v5  ;;  %vm5322_vm0 = vcmp.eq.s32.totalorder (!%p177_p2), %v237_v7, 0  ;;  %v4624_v41 = vld [vmem:[%s7402_s2 + $0x274] ss:$8 sps:$4 sm:$0xff] (!%p177_p2)   ;;  %v4626_v42 = vld [vmem:[%s7402_s2 + $0x270] ss:$8 sps:$4 sm:$0xff] (!%p177_p2)   ;;  %v233_v60 = vadd.s32 (!%p177_p2), 8, %v5286_v3 }
   0xc   : > { %2218 = vmatprep.subr.bf16.mxu0 (!%p177_p2), %v4609_v6  ;;  %v4627_v43 = vld [vmem:[%s7402_s2 + $0x284] ss:$8 sps:$4 sm:$0xff] (!%p177_p2)   ;;  %v4629_v44 = vld [vmem:[%s7402_s2 + $0x280] ss:$8 sps:$4 sm:$0xff] (!%p177_p2)   ;;  %v4630_v45 = vld [vmem:[%s7402_s2 + $0x294] ss:$8 sps:$4 sm:$0xff] (!%p177_p2)  }
   0xd   : > { %s7416_s17 = smov (!%p211_p3, %s4013_s17), 3  ;;  %v4632_v46 = vld [vmem:[%s7402_s2 + $0x290] ss:$8 sps:$4 sm:$0xff]   ;;  %v4633_v47 = vld [vmem:[%s7402_s2 + $0x2a4] ss:$8 sps:$4 sm:$0xff]   ;;  %v238_v61 = vand.u32 15, %v233_v60  ;;  %vm4315_vm11 = vmneg %vm5322_vm0 }
   0xe   : > { %s5297_s28 = sshll.u32 %s7416_s17, 4  ;;  %v4635_v48 = vld [vmem:[%s7402_s2 + $0x2a0] ss:$8 sps:$4 sm:$0xff]   ;;  %v4636_v49 = vld [vmem:[%s7402_s2 + $0x2b4] ss:$8 sps:$4 sm:$0xff]   ;;  %vm353_vm2 = vcmp.lt.s32.totalorder %v5286_v3, 7 }
   0xf   : > { %s5304_s5 = scalar_lea.vmem %s7400_s0, %s5297_s28  ;;  %2219 = vmatpush1.bf16.msra.mxu0 %v4611_v8  ;;  %v4638_v50 = vld [vmem:[%s7402_s2 + $0x2b0] ss:$8 sps:$4 sm:$0xff]   ;;  %v4639_v51 = vld [vmem:[%s7402_s2 + $0x2c4] ss:$8 sps:$4 sm:$0xff]   ;;  %v4641_v52 = vld [vmem:[%s7402_s2 + $0x2c0] ss:$8 sps:$4 sm:$0xff]   ;;  %s6322_s24 = scalar_lea.vmem %s7401_s1, %s5297_s28 }
  0x10   : > { %v247_v9 = vld [vmem:[%s5304_s5] sm:$0xff]  ;;  %v249_v10 = vld [vmem:[%s5304_s5 + $0x10] sm:$0xff]  ;;  %v248_v11 = vld [vmem:[%s5304_s5 + $0x8] sm:$0xff]  ;;  %2220 = vmatprep.subr.bf16.mxu0 %v4612_v16  ;;  %vm5467_vm3 = vcmp.eq.s32.totalorder %v238_v61, 15  ;;  %v5508_v16 = vand.u32 127, %v231_v0  ;;  %vm5245_vm12 = vmmov 1  }
  0x11   : > { %v5312_v12 = vmax.f32 %v247_v9, 0.0  ;;  %v5314_v13 = vmax.f32 %v249_v10, 0.0  ;;  %v250_v14 = vld [vmem:[%s5304_s5 + $0x18] sm:$0xff]  ;;  %v5317_v15 = vmax.f32 %v248_v11, 0.0  ;;  %v4645_v55 = vld [vmem:[%s7402_s2 + $0x2e4] ss:$8 sps:$4 sm:$0xff]   ;;  %vm4316_vm13 = vmpackc.low %vm5245_vm12, %vm4315_vm11 }
  0x12   : > { %v5327_v18 = vmax.f32 %v250_v14, 0.0  ;;  %v4642_v53 = vld [vmem:[%s7402_s2 + $0x2d4] ss:$8 sps:$4 sm:$0xff]   ;;  %v4644_v54 = vld [vmem:[%s7402_s2 + $0x2d0] ss:$8 sps:$4 sm:$0xff]   ;;  %vm243_vm5 = vcmp.lt.s32.totalorder %v5508_v16, 16  ;;  %vm4343_vm14 = vmneg %vm5467_vm3 }
  0x13   : > { %v259_v19 = vrot.slane %v5312_v12, 7  ;;  %v261_v20 = vrot.slane %v5314_v13, 7  ;;  %v260_v21 = vrot.slane %v5317_v15, 7  ;;  %v5334_v22 = vpack.i.bf16 %v5314_v13, %v5312_v12  ;;  %2221 = vmatpush1.bf16.msra.mxu0 %v4614_v24  ;;  %v4647_v56 = vld [vmem:[%s7402_s2 + $0x2e0] ss:$8 sps:$4 sm:$0xff]   ;;  %vm4310_vm9 = vmneg %vm243_vm5 }
  0x14   : > { %v262_v23 = vrot.slane %v5327_v18, 7  ;;  %v5352_v27 = vpack.i.bf16 %v5327_v18, %v5317_v15  ;;  %2222 = vmatprep.subr.bf16.mxu0 %v4615_v32  ;;  %v4648_v57 = vld [vmem:[%s7402_s2 + $0x2f4] ss:$8 sps:$4 sm:$0xff]   ;;  %v4650_v58 = vld [vmem:[%s7402_s2 + $0x2f0] ss:$8 sps:$4 sm:$0xff]   ;;  %v350_v62 = vrot.slane %v5317_v15, 1  ;;  %vm5788_vm10 = vmpackc.low %vm4310_vm9, %vm4310_vm9 }
  0x15   : > { %v5342_v25 = vsel %vm263_vm1, %v259_v19, %v261_v20  ;;  %v5346_v26 = vsel %vm263_vm1, %v261_v20, %v259_v19  ;;  %4554 = vrot.lane.b32.xlu1 %v5334_v22, %s5243_s12  ;;  %v4653_v59 = vld [vmem:[%s7402_s2 + $0x304] ss:$8 sps:$4 sm:$0xff]   ;;  %v352_v63 = vrot.slane %v5327_v18, 1  ;;  %v349_v1 = vrot.slane %v5312_v12, 1  ;;  %v4662_v60 = vld [vmem:[%s7402_s2 + $0x334] ss:$8 sps:$4 sm:$0xff]   ;;  %vm6391_vm15 = vmpackc.low %vm4343_vm14, %vm5245_vm12 }
  0x16   : > { %v268_v28 = vsel %vm5322_vm0, 0.0, %v5346_v26  ;;  %v4321_v29 = vpack.c.bf16 %v5342_v25, %v5346_v26  ;;  %v5361_v30 = vsel %vm263_vm1, %v260_v21, %v262_v23  ;;  %v5365_v31 = vsel %vm263_vm1, %v262_v23, %v260_v21  ;;  %v4660_v61 = vld [vmem:[%s7402_s2 + $0x330] ss:$8 sps:$4 sm:$0xff]   ;;  %v4776_v26 = vld [vmem:[%s7402_s2 + $0x544] ss:$8 sps:$4 sm:$0xff]  }
  0x17   : > { %v5371_v33 = vpack.i.bf16 %v5342_v25, %v268_v28  ;;  %v269_v34 = vsel %vm5322_vm0, 0.0, %v5365_v31  ;;  %2223 = vmatpush1.bf16.msra.mxu0 %v4617_v35  ;;  %v351_v2 = vrot.slane %v5314_v13, 1  ;;  %v5473_v5 = vsel %vm353_vm2, %v350_v62, %v352_v63  ;;  %v4768_v25 = vld [vmem:[%s7402_s2 + $0x530] ss:$8 sps:$4 sm:$0xff]   ;;  %v5167_v17 = vld [vmem:[%s7402_s2 + $0xbc0] ss:$8 sps:$4 sm:$0xff]  }
  0x18   : > { %v5382_v36 = vpack.i.bf16 %v5361_v30, %v269_v34  ;;  %2224 = vmatprep.subr.bf16.mxu0 %v4618_v37  ;;  %v5477_v6 = vsel %vm353_vm2, %v352_v63, %v350_v62  ;;  %v5511_v19 = vadd.s32 128, %v5508_v16  ;;  %vm300_vm7 = vcmp.lt.s32.totalorder %v5508_v16, 112  ;;  %v4765_v62 = vld [vmem:[%s7402_s2 + $0x34] ss:$8 sps:$4 sm:$0xff]   ;;  %v4767_v63 = vld [vmem:[%s7402_s2 + $0x30] ss:$8 sps:$4 sm:$0xff]  }
  0x19   : > { %4544 = vrot.lane.b32.xlu0 %v5371_v33, %s5244_s18  ;;  %4559 = vrot.lane.b32.xlu1 %v5352_v27, %s5243_s12  ;;  %v5481_v7 = vsel %vm353_vm2, %v349_v1, %v351_v2  ;;  %v5485_v8 = vsel %vm353_vm2, %v351_v2, %v349_v1  ;;  %v361_v9 = vsel %vm5467_vm3, 0.0, %v5477_v6  ;;  %v4665_v1 = vld [vmem:[%s7402_s2 + $0x344] ss:$8 sps:$4 sm:$0xff]   ;;  %v4663_v2 = vld [vmem:[%s7402_s2 + $0x340] ss:$8 sps:$4 sm:$0xff]  }
  0x1a   : > { %v360_v10 = vsel %vm5467_vm3, 0.0, %v5485_v8  ;;  %v5494_v11 = vpack.i.bf16 %v361_v9, %v5473_v5  ;;  %vm246_vm4 = vcmp.ge.s32.totalorder %v5511_v19, 240  ;;  %v4771_v9 = vld [vmem:[%s7402_s2 + $0x44] ss:$8 sps:$4 sm:$0xff]  }
  0x1b   : > { %2225 = vmatpush1.bf16.msra.mxu0 %v4620_v38  ;;  %v5497_v14 = vpack.i.bf16 %v360_v10, %v5481_v7  ;;  %vm4323_vm6 = vmneg %vm246_vm4  ;;  %v4773_v10 = vld [vmem:[%s7402_s2 + $0x40] ss:$8 sps:$4 sm:$0xff]  }
  0x1c   : > { %2226 = vmatprep.subr.bf16.mxu0 %v4621_v39  ;;  %vm5526_vm8 = vmpackc.low %vm4323_vm6, %vm4323_vm6 }
  0x1d   : > { %4549 = vrot.lane.b32.xlu0 %v5382_v36, %s5244_s18  ;;  %4569 = vrot.lane.b32.xlu1 %v5352_v27, %s5244_s18 }
  0x1f   : > { %2227 = vmatpush1.bf16.msra.mxu0 %v4623_v40 }
  0x20   : > { %2228 = vmatprep.subr.bf16.mxu0 %v4624_v41 }
  0x21   : > { %4564 = vrot.lane.b32.xlu0 %v5334_v22, %s5244_s18  ;;  %4579 = vrot.lane.b32.xlu1 %v5494_v11, %s5243_s12 }
  0x23   : > { %2229 = vmatpush1.bf16.msra.mxu0 %v4626_v42 }
  0x24   : > { %2230 = vmatprep.subr.bf16.mxu0 %v4627_v43 }
  0x25   : > { %4574 = vrot.lane.b32.xlu0 %v5497_v14, %s5243_s12  ;;  %4589 = vrot.lane.b32.xlu1 %v5382_v36, %s5243_s12  ;;  %v5008_v36 = vld [vmem:[%s7402_s2 + $0x830] ss:$8 sps:$4 sm:$0xff]  }
  0x27   : > { %2231 = vmatpush1.bf16.msra.mxu0 %v4629_v44 }
  0x28   : > { %2232 = vmatprep.subr.bf16.mxu0 %v4630_v45 }
  0x29   : > { %4584 = vrot.lane.b32.xlu0 %v5371_v33, %s5243_s12  ;;  %4599 = vrot.lane.b32.xlu1 %v5494_v11, %s5244_s18  ;;  %v4782_v11 = vld [vmem:[%s7402_s2 + $0x554] ss:$8 sps:$4 sm:$0xff]  }
  0x2b   : > { %2233 = vmatpush1.bf16.msra.mxu0 %v4632_v46 }
  0x2c   : > { %2234 = vmatprep.subr.bf16.mxu0 %v4633_v47  ;;  %v4651_v47 = vld [vmem:[%s7402_s2 + $0x300] ss:$8 sps:$4 sm:$0xff]  }
  0x2d   : > { %4594 = vrot.lane.b32.xlu0 %v5497_v14, %s5244_s18  ;;  %v4780_v14 = vld [vmem:[%s7402_s2 + $0x550] ss:$8 sps:$4 sm:$0xff]  }
  0x2f   : > { %2235 = vmatpush1.bf16.msra.mxu0 %v4635_v48 }
  0x30   : > { %2236 = vmatprep.subr.bf16.mxu0 %v4636_v49 }
  0x33   : > { %2237 = vmatpush1.bf16.msra.mxu0 %v4638_v50  ;;  %v4747_v50 = vld [vmem:[%s7402_s2 + $0x4] ss:$8 sps:$4 sm:$0xff]  }
  0x34   : > { %2238 = vmatprep.subr.bf16.mxu0 %v4639_v51  ;;  %v4749_v51 = vld [vmem:[%s7402_s2] ss:$8 sps:$4 sm:$0xff]   ;;  %2128 = vmatprep.subr.bf16.mxu1 %v4747_v50  ;;  %v4807_v50 = vld [vmem:[%s7402_s2 + $0xa4] ss:$8 sps:$4 sm:$0xff]  }
  0x35   : > { %2129 = vmatpush1.bf16.msra.mxu1 %v4749_v51  ;;  %v4809_v51 = vld [vmem:[%s7402_s2 + $0xa0] ss:$8 sps:$4 sm:$0xff]  }
  0x37   : > { %2239 = vmatpush1.bf16.msra.mxu0 %v4641_v52  ;;  %v4656_v52 = vld [vmem:[%s7402_s2 + $0x314] ss:$8 sps:$4 sm:$0xff]  }
  0x38   : > { %2240 = vmatprep.subr.bf16.mxu0 %v4642_v53  ;;  %v4654_v53 = vld [vmem:[%s7402_s2 + $0x310] ss:$8 sps:$4 sm:$0xff]  }
  0x3b   : > { %2241 = vmatpush1.bf16.msra.mxu0 %v4644_v54  ;;  %v4753_v54 = vld [vmem:[%s7402_s2 + $0x14] ss:$8 sps:$4 sm:$0xff]  }
  0x3c   : > { %2242 = vmatprep.subr.bf16.mxu0 %v4645_v55  ;;  %v4755_v55 = vld [vmem:[%s7402_s2 + $0x10] ss:$8 sps:$4 sm:$0xff]   ;;  %2130 = vmatprep.subr.bf16.mxu1 %v4753_v54  ;;  %v4813_v54 = vld [vmem:[%s7402_s2 + $0xb4] ss:$8 sps:$4 sm:$0xff]  }
  0x3d   : > { %2131 = vmatpush1.bf16.msra.mxu1 %v4755_v55  ;;  %v4815_v55 = vld [vmem:[%s7402_s2 + $0xb0] ss:$8 sps:$4 sm:$0xff]  }
  0x3f   : > { %2243 = vmatpush1.bf16.msra.mxu0 %v4647_v56  ;;  %v4659_v56 = vld [vmem:[%s7402_s2 + $0x324] ss:$8 sps:$4 sm:$0xff]  }
  0x40   : > { %2244 = vmatprep.subr.bf16.mxu0 %v4648_v57  ;;  %v4657_v57 = vld [vmem:[%s7402_s2 + $0x320] ss:$8 sps:$4 sm:$0xff]  }
  0x43   : > { %2245 = vmatpush1.bf16.msra.mxu0 %v4650_v58  ;;  %v4759_v58 = vld [vmem:[%s7402_s2 + $0x24] ss:$8 sps:$4 sm:$0xff]  }
  0x44   : > { %2257 = vmatprep.subr.bf16.mxu0 %v4653_v59  ;;  %v4761_v59 = vld [vmem:[%s7402_s2 + $0x20] ss:$8 sps:$4 sm:$0xff]   ;;  %2132 = vmatprep.subr.bf16.mxu1 %v4759_v58  ;;  %v4819_v58 = vld [vmem:[%s7402_s2 + $0xc4] ss:$8 sps:$4 sm:$0xff]  }
  0x45   : > { %2133 = vmatpush1.bf16.msra.mxu1 %v4761_v59  ;;  %v4821_v59 = vld [vmem:[%s7402_s2 + $0xc0] ss:$8 sps:$4 sm:$0xff]  }
  0x46   : > { %2134 = vmatprep.subr.bf16.mxu1 %v4765_v62 }
  0x49   : > { %2135 = vmatpush1.bf16.msra.mxu1 %v4767_v63 }
  0x4a   : > { %2136 = vmatprep.subr.bf16.mxu1 %v4771_v9  ;;  %v4695_v9 = vld [vmem:[%s7402_s2 + $0x3e4] ss:$8 sps:$4 sm:$0xff]  }
  0x4d   : > { %2137 = vmatpush1.bf16.msra.mxu1 %v4773_v10 }
  0x87   : > { %v4555_v20 = vpop.permute.xlu1 %4554 }
  0x88   : > { %v4557_v21 = vunpack.i.h.bf16 %v4555_v20  ;;  %v4556_v22 = vunpack.i.l.bf16 %v4555_v20  ;;  %v4668_v20 = vld [vmem:[%s7402_s2 + $0x354] ss:$8 sps:$4 sm:$0xff]  }
  0x8b   : > { %v4545_v23 = vpop.permute.xlu0 %4544  ;;  %v4560_v24 = vpop.permute.xlu1 %4559 }
  0x8c   : > { %v4562_v27 = vunpack.i.h.bf16 %v4560_v24  ;;  %v4561_v28 = vunpack.i.l.bf16 %v4560_v24  ;;  %v4547_v33 = vunpack.i.h.bf16 %v4545_v23  ;;  %v4546_v34 = vunpack.i.l.bf16 %v4545_v23  ;;  %v4779_v23 = vld [vmem:[%s7402_s2 + $0x50] ss:$8 sps:$4 sm:$0xff]   ;;  %v4671_v24 = vld [vmem:[%s7402_s2 + $0x364] ss:$8 sps:$4 sm:$0xff]  }
  0x8e   : > { %v5519_v0 = vsel %vm243_vm5, %v4561_v28, %v4556_v22  ;;  %v5523_v32 = vsel %vm243_vm5, %v4562_v27, %v4557_v21  ;;  %v319_v40 = vsel %vm243_vm5, %v4556_v22, %v4561_v28  ;;  %v320_v41 = vsel %vm243_vm5, %v4557_v21, %v4562_v27  ;;  %v4666_v21 = vld [vmem:[%s7402_s2 + $0x350] ss:$8 sps:$4 sm:$0xff]   ;;  %v4777_v22 = vld [vmem:[%s7402_s2 + $0x54] ss:$8 sps:$4 sm:$0xff]   ;;  %v4669_v27 = vld [vmem:[%s7402_s2 + $0x360] ss:$8 sps:$4 sm:$0xff]  }
  0x8f   : > { %v4550_v35 = vpop.permute.xlu0 %4549  ;;  %v4331_v37 = vpack.c.bf16 %v5523_v32, %v5519_v0  ;;  %v328_v49 = vpack.c.bf16 %v320_v41, %v319_v40  ;;  %2138 = vmatprep.subr.bf16.mxu1 %v4777_v22  ;;  %v4783_v28 = vld [vmem:[%s7402_s2 + $0x64] ss:$8 sps:$4 sm:$0xff]   ;;  %v4675_v41 = vld [vmem:[%s7402_s2 + $0x380] ss:$8 sps:$4 sm:$0xff]   ;;  %v4570_v62 = vpop.permute.xlu1 %4569  ;;  %v4849_v0 = vld [vmem:[%s7402_s2 + $0x110] ss:$8 sps:$4 sm:$0xff]  }
  0x90   : > { %v4552_v38 = vunpack.i.h.bf16 %v4550_v35  ;;  %v4551_v39 = vunpack.i.l.bf16 %v4550_v35  ;;  %2139 = vmatpush1.bf16.msra.mxu1 %v4779_v23  ;;  %v4672_v35 = vld [vmem:[%s7402_s2 + $0x370] ss:$8 sps:$4 sm:$0xff]   ;;  %v4677_v40 = vld [vmem:[%s7402_s2 + $0x384] ss:$8 sps:$4 sm:$0xff]   ;;  %v4572_v10 = vunpack.i.h.bf16 %v4570_v62  ;;  %v4705_v32 = vld [vmem:[%s7402_s2 + $0x420] ss:$8 sps:$4 sm:$0xff]  }
  0x91   : > { %2140 = vmatprep.subr.bf16.mxu1 %v4783_v28 }
  0x92   : > { %v303_v42 = vsel %vm300_vm7, %v4551_v39, %v4546_v34  ;;  %v304_v43 = vsel %vm300_vm7, %v4552_v38, %v4547_v33  ;;  %v301_v44 = vsel %vm300_vm7, %v4546_v34, %v4551_v39  ;;  %v302_v45 = vsel %vm300_vm7, %v4547_v33, %v4552_v38  ;;  %v4785_v33 = vld [vmem:[%s7402_s2 + $0x60] ss:$8 sps:$4 sm:$0xff]   ;;  %v4674_v34 = vld [vmem:[%s7402_s2 + $0x374] ss:$8 sps:$4 sm:$0xff]   ;;  %v4791_v39 = vld [vmem:[%s7402_s2 + $0x70] ss:$8 sps:$4 sm:$0xff]  }
  0x93   : > { %v4326_v46 = vpack.c.bf16 %v304_v43, %v303_v42  ;;  %v309_v48 = vpack.c.bf16 %v302_v45, %v301_v44  ;;  %v4789_v38 = vld [vmem:[%s7402_s2 + $0x74] ss:$8 sps:$4 sm:$0xff]   ;;  %v4795_v42 = vld [vmem:[%s7402_s2 + $0x84] ss:$8 sps:$4 sm:$0xff]   ;;  %v4797_v43 = vld [vmem:[%s7402_s2 + $0x80] ss:$8 sps:$4 sm:$0xff]   ;;  %v4565_v63 = vpop.permute.xlu0 %4564 }
  0x94   : > { %2141 = vmatpush1.bf16.msra.mxu1 %v4785_v33  ;;  %v4680_v44 = vld [vmem:[%s7402_s2 + $0x394] ss:$8 sps:$4 sm:$0xff]   ;;  %v4678_v45 = vld [vmem:[%s7402_s2 + $0x390] ss:$8 sps:$4 sm:$0xff]   ;;  %v4566_v22 = vunpack.i.l.bf16 %v4565_v63  ;;  %v4693_v33 = vld [vmem:[%s7402_s2 + $0x3e0] ss:$8 sps:$4 sm:$0xff]  }
  0x95   : > { %4327 = vmatprep.mubr.msk.bf16.mxu0 %vm5526_vm8, %v4326_v46  ;;  %2142 = vmatprep.subr.bf16.mxu1 %v4789_v38  ;;  %v4801_v46 = vld [vmem:[%s7402_s2 + $0x94] ss:$8 sps:$4 sm:$0xff]   ;;  %v4831_v38 = vld [vmem:[%s7402_s2 + $0xe4] ss:$8 sps:$4 sm:$0xff]  }
  0x96   : > { %2247 = vmatmul.mubr.bf16.vlgmr.msra.gmra.mrb[0].mxu0 %v309_v48  ;;  %v4683_v48 = vld [vmem:[%s7402_s2 + $0x3a4] ss:$8 sps:$4 sm:$0xff]  }
  0x97   : > { %2258 = vmatpush1.bf16.msra.mxu0 %v4651_v47  ;;  %2289 = vmatprep.mubr.bf16.mxu0 %v328_v49  ;;  %v4803_v47 = vld [vmem:[%s7402_s2 + $0x90] ss:$8 sps:$4 sm:$0xff]   ;;  %v4681_v49 = vld [vmem:[%s7402_s2 + $0x3a0] ss:$8 sps:$4 sm:$0xff]  }
  0x98   : > { %2259 = vmatprep.subr.bf16.mxu0 %v4656_v52  ;;  %2143 = vmatpush1.bf16.msra.mxu1 %v4791_v39  ;;  %v4686_v52 = vld [vmem:[%s7402_s2 + $0x3b4] ss:$8 sps:$4 sm:$0xff]   ;;  %v4833_v39 = vld [vmem:[%s7402_s2 + $0xe0] ss:$8 sps:$4 sm:$0xff]  }
  0x99   : > { %2144 = vmatprep.subr.bf16.mxu1 %v4795_v42  ;;  %v5748_v42 = vpop.permute.xlu0 %4574 }
  0x9b   : > { %2260 = vmatpush1.bf16.msra.mxu0 %v4654_v53  ;;  %v4684_v53 = vld [vmem:[%s7402_s2 + $0x3b0] ss:$8 sps:$4 sm:$0xff]  }
  0x9c   : > { %2261 = vmatprep.subr.bf16.mxu0 %v4659_v56  ;;  %2145 = vmatpush1.bf16.msra.mxu1 %v4797_v43  ;;  %v4689_v56 = vld [vmem:[%s7402_s2 + $0x3c4] ss:$8 sps:$4 sm:$0xff]  }
  0x9d   : > { %2146 = vmatprep.subr.bf16.mxu1 %v4801_v46  ;;  %v4576_v46 = vunpack.i.l.bf16 %v5748_v42 }
  0x9f   : > { %2262 = vmatpush1.bf16.msra.mxu0 %v4657_v57  ;;  %v4687_v57 = vld [vmem:[%s7402_s2 + $0x3c0] ss:$8 sps:$4 sm:$0xff]  }
  0xa0   : > { %2263 = vmatprep.subr.bf16.mxu0 %v4662_v60  ;;  %2147 = vmatpush1.bf16.msra.mxu1 %v4803_v47  ;;  %v4692_v60 = vld [vmem:[%s7402_s2 + $0x3d4] ss:$8 sps:$4 sm:$0xff]   ;;  %v4696_v47 = vld [vmem:[%s7402_s2 + $0x3f0] ss:$8 sps:$4 sm:$0xff]  }
  0xa1   : > { %2148 = vmatprep.subr.bf16.mxu1 %v4807_v50  ;;  %v4837_v50 = vld [vmem:[%s7402_s2 + $0xf4] ss:$8 sps:$4 sm:$0xff]  }
  0xa3   : > { %2264 = vmatpush1.bf16.msra.mxu0 %v4660_v61  ;;  %v4690_v61 = vld [vmem:[%s7402_s2 + $0x3d0] ss:$8 sps:$4 sm:$0xff]  }
  0xa4   : > { %2265 = vmatprep.subr.bf16.mxu0 %v4665_v1  ;;  %2149 = vmatpush1.bf16.msra.mxu1 %v4809_v51  ;;  %v4825_v1 = vld [vmem:[%s7402_s2 + $0xd4] ss:$8 sps:$4 sm:$0xff]   ;;  %v4839_v51 = vld [vmem:[%s7402_s2 + $0xf0] ss:$8 sps:$4 sm:$0xff]  }
  0xa5   : > { %2150 = vmatprep.subr.bf16.mxu1 %v4813_v54 }
  0xa7   : > { %2266 = vmatpush1.bf16.msra.mxu0 %v4663_v2  ;;  %v4827_v2 = vld [vmem:[%s7402_s2 + $0xd0] ss:$8 sps:$4 sm:$0xff]  }
  0xa8   : > { %2267 = vmatprep.subr.bf16.mxu0 %v4668_v20  ;;  %2151 = vmatpush1.bf16.msra.mxu1 %v4815_v55  ;;  %v4571_v20 = vunpack.i.l.bf16 %v4570_v62  ;;  %v4585_v55 = vpop.permute.xlu0 %4584  ;;  %v4699_v62 = vld [vmem:[%s7402_s2 + $0x400] ss:$8 sps:$4 sm:$0xff]  }
  0xa9   : > { %2152 = vmatprep.subr.bf16.mxu1 %v4819_v58  ;;  %v4587_v58 = vunpack.i.h.bf16 %v4585_v55 }
  0xaa   : > { %v5728_v28 = vsel %vm300_vm7, %v4571_v20, %v4566_v22 }
  0xab   : > { %2268 = vmatpush1.bf16.msra.mxu0 %v4666_v21  ;;  %v4567_v21 = vunpack.i.h.bf16 %v4565_v63 }
  0xac   : > { %2269 = vmatprep.subr.bf16.mxu0 %v4671_v24  ;;  %2153 = vmatpush1.bf16.msra.mxu1 %v4821_v59  ;;  %v4586_v59 = vunpack.i.l.bf16 %v4585_v55  ;;  %v4869_v55 = vld [vmem:[%s7402_s2 + $0x144] ss:$8 sps:$4 sm:$0xff]  }
  0xad   : > { %2154 = vmatprep.subr.bf16.mxu1 %v4825_v1  ;;  %v5716_v23 = vsel %vm300_vm7, %v4567_v21, %v4572_v10  ;;  %v5720_v24 = vsel %vm300_vm7, %v4572_v10, %v4567_v21  ;;  %v4843_v21 = vld [vmem:[%s7402_s2 + $0x100] ss:$8 sps:$4 sm:$0xff]  }
  0xaf   : > { %2270 = vmatpush1.bf16.msra.mxu0 %v4669_v27  ;;  %v5724_v27 = vsel %vm300_vm7, %v4566_v22, %v4571_v20  ;;  %v4702_v22 = vld [vmem:[%s7402_s2 + $0x410] ss:$8 sps:$4 sm:$0xff]  }
  0xb0   : > { %2271 = vmatprep.subr.bf16.mxu0 %v4674_v34  ;;  %2155 = vmatpush1.bf16.msra.mxu1 %v4827_v2  ;;  %v347_v34 = vpack.c.bf16 %v5716_v23, %v5724_v27  ;;  %v4860_v23 = vld [vmem:[%s7402_s2 + $0x624] ss:$8 sps:$4 sm:$0xff]   ;;  %v4858_v27 = vld [vmem:[%s7402_s2 + $0x620] ss:$8 sps:$4 sm:$0xff]  }
  0xb1   : > { %2156 = vmatprep.subr.bf16.mxu1 %v4831_v38  ;;  %v4707_v38 = vld [vmem:[%s7402_s2 + $0x424] ss:$8 sps:$4 sm:$0xff]  }
  0xb3   : > { %2272 = vmatpush1.bf16.msra.mxu0 %v4672_v35  ;;  %v4336_v35 = vpack.c.bf16 %v5720_v24, %v5728_v28  ;;  %v4770_v24 = vld [vmem:[%s7402_s2 + $0x534] ss:$8 sps:$4 sm:$0xff]   ;;  %v4788_v28 = vld [vmem:[%s7402_s2 + $0x564] ss:$8 sps:$4 sm:$0xff]  }
  0xb4   : > { %2273 = vmatprep.subr.bf16.mxu0 %v4677_v40  ;;  %v4698_v40 = vld [vmem:[%s7402_s2 + $0x3f4] ss:$8 sps:$4 sm:$0xff]   ;;  %2157 = vmatpush1.bf16.msra.mxu1 %v4833_v39 }
  0xb5   : > { %2158 = vmatprep.subr.bf16.mxu1 %v4837_v50  ;;  %v4710_v39 = vld [vmem:[%s7402_s2 + $0x434] ss:$8 sps:$4 sm:$0xff]  }
  0xb6   : > { %v4863_v50 = vld [vmem:[%s7402_s2 + $0x134] ss:$8 sps:$4 sm:$0xff]  }
  0xb7   : > { %2274 = vmatpush1.bf16.msra.mxu0 %v4675_v41  ;;  %v5746_v41 = vpop.permute.xlu1 %4579 }
  0xb8   : > { %2275 = vmatprep.subr.bf16.mxu0 %v4680_v44  ;;  %v4582_v43 = vunpack.i.h.bf16 %v5746_v41  ;;  %v4581_v44 = vunpack.i.l.bf16 %v5746_v41  ;;  %2159 = vmatpush1.bf16.msra.mxu1 %v4839_v51  ;;  %v4713_v51 = vld [vmem:[%s7402_s2 + $0x444] ss:$8 sps:$4 sm:$0xff]   ;;  %v4750_v41 = vld [vmem:[%s7402_s2 + $0x500] ss:$8 sps:$4 sm:$0xff]  }
  0xbb   : > { %2276 = vmatpush1.bf16.msra.mxu0 %v4678_v45  ;;  %v4577_v45 = vunpack.i.h.bf16 %v5748_v42  ;;  %v4590_v54 = vpop.permute.xlu1 %4589  ;;  %v4764_v42 = vld [vmem:[%s7402_s2 + $0x524] ss:$8 sps:$4 sm:$0xff]  }
  0xbc   : > { %2277 = vmatprep.subr.bf16.mxu0 %v4683_v48 }
  0xbd   : > { %v5763_v48 = vsel %vm243_vm5, %v4582_v43, %v4577_v45 }
  0xbf   : > { %2278 = vmatpush1.bf16.msra.mxu0 %v4681_v49  ;;  %v5771_v49 = vsel %vm243_vm5, %v4581_v44, %v4576_v46 }
  0xc0   : > { %2279 = vmatprep.subr.bf16.mxu0 %v4686_v52  ;;  %v4701_v52 = vld [vmem:[%s7402_s2 + $0x404] ss:$8 sps:$4 sm:$0xff]  }
  0xc3   : > { %2280 = vmatpush1.bf16.msra.mxu0 %v4684_v53  ;;  %v4341_v53 = vpack.c.bf16 %v5763_v48, %v5771_v49  ;;  %v5088_v48 = vld [vmem:[%s7402_s2 + $0xa14] ss:$8 sps:$4 sm:$0xff]   ;;  %v4947_v49 = vld [vmem:[%s7402_s2 + $0x724] ss:$8 sps:$4 sm:$0xff]  }
  0xc4   : > { %2281 = vmatprep.subr.bf16.mxu0 %v4689_v56  ;;  %v4592_v56 = vunpack.i.h.bf16 %v4590_v54 }
  0xc6   : > { %v283_v63 = vsel %vm243_vm5, %v4592_v56, %v4587_v58 }
  0xc7   : > { %2282 = vmatpush1.bf16.msra.mxu0 %v4687_v57  ;;  %v4591_v57 = vunpack.i.l.bf16 %v4590_v54  ;;  %v4711_v54 = vld [vmem:[%s7402_s2 + $0x440] ss:$8 sps:$4 sm:$0xff]  }
  0xc8   : > { %2283 = vmatprep.subr.bf16.mxu0 %v4692_v60  ;;  %v330_v60 = vpack.c.bf16 %v5327_v18, %v5317_v15  ;;  %v281_v15 = vsel %vm243_vm5, %v4587_v58, %v4592_v56  ;;  %v4845_v18 = vld [vmem:[%s7402_s2 + $0x104] ss:$8 sps:$4 sm:$0xff]   ;;  %v4716_v56 = vld [vmem:[%s7402_s2 + $0x454] ss:$8 sps:$4 sm:$0xff]   ;;  %v4714_v58 = vld [vmem:[%s7402_s2 + $0x450] ss:$8 sps:$4 sm:$0xff]  }
  0xc9   : > { %v282_v1 = vsel %vm243_vm5, %v4591_v57, %v4586_v59  ;;  %v280_v2 = vsel %vm243_vm5, %v4586_v59, %v4591_v57  ;;  %2171 = vmatprep.subr.bf16.mxu1 %v4845_v18  ;;  %v4867_v57 = vld [vmem:[%s7402_s2 + $0x140] ss:$8 sps:$4 sm:$0xff]   ;;  %v4875_v59 = vld [vmem:[%s7402_s2 + $0x154] ss:$8 sps:$4 sm:$0xff]   ;;  %v4720_v18 = vld [vmem:[%s7402_s2 + $0x470] ss:$8 sps:$4 sm:$0xff]  }
  0xca   : > { %v4313_v10 = vpack.c.bf16 %v283_v63, %v282_v1  ;;  %v289_v20 = vpack.c.bf16 %v281_v15, %v280_v2  ;;  %v4717_v63 = vld [vmem:[%s7402_s2 + $0x460] ss:$8 sps:$4 sm:$0xff]   ;;  %v4881_v1 = vld [vmem:[%s7402_s2 + $0x164] ss:$8 sps:$4 sm:$0xff]   ;;  %v4722_v2 = vld [vmem:[%s7402_s2 + $0x474] ss:$8 sps:$4 sm:$0xff]  }
  0xcb   : > { %2284 = vmatpush1.bf16.msra.mxu0 %v4690_v61  ;;  %v4879_v15 = vld [vmem:[%s7402_s2 + $0x160] ss:$8 sps:$4 sm:$0xff]  }
  0xcc   : > { %2285 = vmatprep.subr.bf16.mxu0 %v4695_v9  ;;  %v4704_v9 = vld [vmem:[%s7402_s2 + $0x414] ss:$8 sps:$4 sm:$0xff]   ;;  %2160 = vmatprep.mubr.bf16.mxu1 %v289_v20  ;;  %v4885_v20 = vld [vmem:[%s7402_s2 + $0x170] ss:$8 sps:$4 sm:$0xff]   ;;  %v4945_v61 = vld [vmem:[%s7402_s2 + $0x720] ss:$8 sps:$4 sm:$0xff]  }
  0xcd   : > { %4314 = vmatmul.mubr.msk.bf16.vlgmr.msra.gmra.mrb[0].mxu1 %vm5788_vm10, %v4313_v10  ;;  %v4725_v10 = vld [vmem:[%s7402_s2 + $0x484] ss:$8 sps:$4 sm:$0xff]  }
  0xce   : > { %2172 = vmatpush1.bf16.msra.mxu1 %v4843_v21  ;;  %v4723_v21 = vld [vmem:[%s7402_s2 + $0x480] ss:$8 sps:$4 sm:$0xff]  }
  0xcf   : > { %2286 = vmatpush1.bf16.msra.mxu0 %v4693_v33  ;;  %v4851_v33 = vld [vmem:[%s7402_s2 + $0x114] ss:$8 sps:$4 sm:$0xff]  }
  0xd0   : > { %2287 = vmatprep.subr.bf16.mxu0 %v4698_v40  ;;  %2173 = vmatprep.subr.bf16.mxu1 %v4851_v33  ;;  %v4855_v40 = vld [vmem:[%s7402_s2 + $0x120] ss:$8 sps:$4 sm:$0xff]   ;;  %v4728_v33 = vld [vmem:[%s7402_s2 + $0x494] ss:$8 sps:$4 sm:$0xff]  }
  0xd2   : > { %2174 = vmatpush1.bf16.msra.mxu1 %v4849_v0  ;;  %v4726_v0 = vld [vmem:[%s7402_s2 + $0x490] ss:$8 sps:$4 sm:$0xff]  }
  0xd3   : > { %2288 = vmatpush1.bf16.msra.mxu0 %v4696_v47  ;;  %v4708_v47 = vld [vmem:[%s7402_s2 + $0x430] ss:$8 sps:$4 sm:$0xff]  }
  0xd4   : > { %2300 = vmatprep.subr.bf16.mxu0 %v4701_v52  ;;  %v4861_v52 = vld [vmem:[%s7402_s2 + $0x130] ss:$8 sps:$4 sm:$0xff]  }
  0xd6   : > { %4332 = vmatmul.mubr.msk.bf16.vlgmr.msra.gmra.mrb[0].mxu0 %vm5788_vm10, %v4331_v37  ;;  %v4857_v37 = vld [vmem:[%s7402_s2 + $0x124] ss:$8 sps:$4 sm:$0xff]  }
  0xd7   : > { %2301 = vmatpush1.bf16.msra.mxu0 %v4699_v62  ;;  %2332 = vmatprep.mubr.bf16.mxu0 %v330_v60  ;;  %v4719_v60 = vld [vmem:[%s7402_s2 + $0x464] ss:$8 sps:$4 sm:$0xff]   ;;  %v4873_v62 = vld [vmem:[%s7402_s2 + $0x150] ss:$8 sps:$4 sm:$0xff]  }
  0xd8   : > { %2302 = vmatprep.subr.bf16.mxu0 %v4704_v9  ;;  %2175 = vmatprep.subr.bf16.mxu1 %v4857_v37  ;;  %v4887_v9 = vld [vmem:[%s7402_s2 + $0x174] ss:$8 sps:$4 sm:$0xff]   ;;  %v4731_v37 = vld [vmem:[%s7402_s2 + $0x4a4] ss:$8 sps:$4 sm:$0xff]  }
  0xd9   : > { %2176 = vmatpush1.bf16.msra.mxu1 %v4855_v40  ;;  %v4729_v40 = vld [vmem:[%s7402_s2 + $0x4a0] ss:$8 sps:$4 sm:$0xff]  }
  0xda   : > { %2177 = vmatprep.subr.bf16.mxu1 %v4863_v50  ;;  %v4734_v50 = vld [vmem:[%s7402_s2 + $0x4b4] ss:$8 sps:$4 sm:$0xff]  }
  0xdb   : > { %2303 = vmatpush1.bf16.msra.mxu0 %v4702_v22  ;;  %v4893_v22 = vld [vmem:[%s7402_s2 + $0x184] ss:$8 sps:$4 sm:$0xff]  }
  0xdc   : > { %2304 = vmatprep.subr.bf16.mxu0 %v4707_v38  ;;  %v4891_v38 = vld [vmem:[%s7402_s2 + $0x180] ss:$8 sps:$4 sm:$0xff]  }
  0xdd   : > { %2178 = vmatpush1.bf16.msra.mxu1 %v4861_v52  ;;  %v4732_v52 = vld [vmem:[%s7402_s2 + $0x4b0] ss:$8 sps:$4 sm:$0xff]  }
  0xde   : > { %2179 = vmatprep.subr.bf16.mxu1 %v4869_v55  ;;  %v4737_v55 = vld [vmem:[%s7402_s2 + $0x4c4] ss:$8 sps:$4 sm:$0xff]  }
  0xdf   : > { %2305 = vmatpush1.bf16.msra.mxu0 %v4705_v32  ;;  %v4899_v32 = vld [vmem:[%s7402_s2 + $0x194] ss:$8 sps:$4 sm:$0xff]  }
  0xe0   : > { %2306 = vmatprep.subr.bf16.mxu0 %v4710_v39  ;;  %v4897_v39 = vld [vmem:[%s7402_s2 + $0x190] ss:$8 sps:$4 sm:$0xff]  }
  0xe1   : > { %2180 = vmatpush1.bf16.msra.mxu1 %v4867_v57  ;;  %v4735_v57 = vld [vmem:[%s7402_s2 + $0x4c0] ss:$8 sps:$4 sm:$0xff]  }
  0xe2   : > { %2181 = vmatprep.subr.bf16.mxu1 %v4875_v59  ;;  %v4740_v59 = vld [vmem:[%s7402_s2 + $0x4d4] ss:$8 sps:$4 sm:$0xff]  }
  0xe3   : > { %2307 = vmatpush1.bf16.msra.mxu0 %v4708_v47  ;;  %v4905_v47 = vld [vmem:[%s7402_s2 + $0x1a4] ss:$8 sps:$4 sm:$0xff]  }
  0xe4   : > { %2308 = vmatprep.subr.bf16.mxu0 %v4713_v51  ;;  %v4903_v51 = vld [vmem:[%s7402_s2 + $0x1a0] ss:$8 sps:$4 sm:$0xff]  }
  0xe5   : > { %2182 = vmatpush1.bf16.msra.mxu1 %v4873_v62  ;;  %v4738_v62 = vld [vmem:[%s7402_s2 + $0x4d0] ss:$8 sps:$4 sm:$0xff]  }
  0xe6   : > { %2183 = vmatprep.subr.bf16.mxu1 %v4881_v1  ;;  %v4743_v1 = vld [vmem:[%s7402_s2 + $0x4e4] ss:$8 sps:$4 sm:$0xff]  }
  0xe7   : > { %2309 = vmatpush1.bf16.msra.mxu0 %v4711_v54  ;;  %v4911_v54 = vld [vmem:[%s7402_s2 + $0x1b4] ss:$8 sps:$4 sm:$0xff]  }
  0xe8   : > { %2310 = vmatprep.subr.bf16.mxu0 %v4716_v56  ;;  %v4909_v56 = vld [vmem:[%s7402_s2 + $0x1b0] ss:$8 sps:$4 sm:$0xff]  }
  0xe9   : > { %2184 = vmatpush1.bf16.msra.mxu1 %v4879_v15  ;;  %v4741_v15 = vld [vmem:[%s7402_s2 + $0x4e0] ss:$8 sps:$4 sm:$0xff]  }
  0xea   : > { %2185 = vmatprep.subr.bf16.mxu1 %v4887_v9  ;;  %v4746_v9 = vld [vmem:[%s7402_s2 + $0x4f4] ss:$8 sps:$4 sm:$0xff]  }
  0xeb   : > { %2311 = vmatpush1.bf16.msra.mxu0 %v4714_v58  ;;  %v4917_v58 = vld [vmem:[%s7402_s2 + $0x1c4] ss:$8 sps:$4 sm:$0xff]  }
  0xec   : > { %2312 = vmatprep.subr.bf16.mxu0 %v4719_v60  ;;  %v4915_v60 = vld [vmem:[%s7402_s2 + $0x1c0] ss:$8 sps:$4 sm:$0xff]  }
  0xed   : > { %2186 = vmatpush1.bf16.msra.mxu1 %v4885_v20  ;;  %v4744_v20 = vld [vmem:[%s7402_s2 + $0x4f0] ss:$8 sps:$4 sm:$0xff]  }
  0xee   : > { %2187 = vmatprep.subr.bf16.mxu1 %v4893_v22  ;;  %v4317_v22 = vpack.c.bf16 %v5361_v30, %v5365_v31  ;;  %v6015_v30 = vsel %vm243_vm5, %v4577_v45, %v4582_v43  ;;  %v329_v31 = vpack.c.bf16 %v5314_v13, %v5312_v12  ;;  %v4758_v12 = vld [vmem:[%s7402_s2 + $0x514] ss:$8 sps:$4 sm:$0xff]   ;;  %v4756_v13 = vld [vmem:[%s7402_s2 + $0x510] ss:$8 sps:$4 sm:$0xff]   ;;  %v4762_v43 = vld [vmem:[%s7402_s2 + $0x520] ss:$8 sps:$4 sm:$0xff]  }
  0xef   : > { %2313 = vmatpush1.bf16.msra.mxu0 %v4717_v63  ;;  %v4923_v63 = vld [vmem:[%s7402_s2 + $0x1d4] ss:$8 sps:$4 sm:$0xff]   ;;  %v4792_v45 = vld [vmem:[%s7402_s2 + $0x570] ss:$8 sps:$4 sm:$0xff]  }
  0xf0   : > { %2314 = vmatprep.subr.bf16.mxu0 %v4722_v2  ;;  %v4921_v2 = vld [vmem:[%s7402_s2 + $0x1d0] ss:$8 sps:$4 sm:$0xff]   ;;  %4318 = vmatprep.mubr.msk.bf16.mxu1 %vm4316_vm13, %v4317_v22  ;;  %v4866_v22 = vld [vmem:[%s7402_s2 + $0x634] ss:$8 sps:$4 sm:$0xff]  }
  0xf1   : > { %2188 = vmatpush1.bf16.msra.mxu1 %v4891_v38  ;;  %v4933_v38 = vld [vmem:[%s7402_s2 + $0x1f0] ss:$8 sps:$4 sm:$0xff]  }
  0xf2   : > { %2189 = vmatprep.subr.bf16.mxu1 %v4899_v32 }
  0xf3   : > { %2315 = vmatpush1.bf16.msra.mxu0 %v4720_v18  ;;  %v4929_v18 = vld [vmem:[%s7402_s2 + $0x1e4] ss:$8 sps:$4 sm:$0xff]  }
  0xf4   : > { %2316 = vmatprep.subr.bf16.mxu0 %v4725_v10  ;;  %v4927_v10 = vld [vmem:[%s7402_s2 + $0x1e0] ss:$8 sps:$4 sm:$0xff]  }
  0xf5   : > { %2190 = vmatpush1.bf16.msra.mxu1 %v4897_v39  ;;  %v4806_v39 = vld [vmem:[%s7402_s2 + $0x594] ss:$8 sps:$4 sm:$0xff]  }
  0xf6   : > { %2191 = vmatprep.subr.bf16.mxu1 %v4905_v47  ;;  %v4812_v47 = vld [vmem:[%s7402_s2 + $0x5a4] ss:$8 sps:$4 sm:$0xff]  }
  0xf7   : > { %2317 = vmatpush1.bf16.msra.mxu0 %v4723_v21  ;;  %v4935_v21 = vld [vmem:[%s7402_s2 + $0x1f4] ss:$8 sps:$4 sm:$0xff]  }
  0xf8   : > { %2318 = vmatprep.subr.bf16.mxu0 %v4728_v33  ;;  %v4752_v33 = vld [vmem:[%s7402_s2 + $0x504] ss:$8 sps:$4 sm:$0xff]  }
  0xf9   : > { %2192 = vmatpush1.bf16.msra.mxu1 %v4903_v51  ;;  %v4818_v51 = vld [vmem:[%s7402_s2 + $0x5b4] ss:$8 sps:$4 sm:$0xff]  }
  0xfa   : > { %2193 = vmatprep.subr.bf16.mxu1 %v4911_v54  ;;  %v4824_v54 = vld [vmem:[%s7402_s2 + $0x5c4] ss:$8 sps:$4 sm:$0xff]  }
  0xfb   : > { %2319 = vmatpush1.bf16.msra.mxu0 %v4726_v0  ;;  %v6007_v0 = vsel %vm243_vm5, %v4576_v46, %v4581_v44  ;;  %v4794_v44 = vld [vmem:[%s7402_s2 + $0x574] ss:$8 sps:$4 sm:$0xff]   ;;  %v4800_v46 = vld [vmem:[%s7402_s2 + $0x584] ss:$8 sps:$4 sm:$0xff]  }
  0xfc   : > { %2320 = vmatprep.subr.bf16.mxu0 %v4731_v37  ;;  %v379_v32 = vpack.c.bf16 %v6015_v30, %v6007_v0  ;;  %v4798_v37 = vld [vmem:[%s7402_s2 + $0x580] ss:$8 sps:$4 sm:$0xff]   ;;  %v5007_v0 = vld [vmem:[%s7402_s2 + $0x934] ss:$8 sps:$4 sm:$0xff]   ;;  %v4872_v30 = vld [vmem:[%s7402_s2 + $0x644] ss:$8 sps:$4 sm:$0xff]  }
  0xfd   : > { %2194 = vmatpush1.bf16.msra.mxu1 %v4909_v56  ;;  %v4830_v56 = vld [vmem:[%s7402_s2 + $0x5d4] ss:$8 sps:$4 sm:$0xff]  }
  0xfe   : > { %2195 = vmatprep.subr.bf16.mxu1 %v4917_v58  ;;  %v4836_v58 = vld [vmem:[%s7402_s2 + $0x5e4] ss:$8 sps:$4 sm:$0xff]  }
  0xff   : > { %2321 = vmatpush1.bf16.msra.mxu0 %v4729_v40  ;;  %v4804_v40 = vld [vmem:[%s7402_s2 + $0x590] ss:$8 sps:$4 sm:$0xff]  }
 0x100   : > { %2322 = vmatprep.subr.bf16.mxu0 %v4734_v50  ;;  %v4810_v50 = vld [vmem:[%s7402_s2 + $0x5a0] ss:$8 sps:$4 sm:$0xff]  }
 0x101   : > { %2196 = vmatpush1.bf16.msra.mxu1 %v4915_v60  ;;  %v4842_v60 = vld [vmem:[%s7402_s2 + $0x5f4] ss:$8 sps:$4 sm:$0xff]  }
 0x102   : > { %2197 = vmatprep.subr.bf16.mxu1 %v4923_v63  ;;  %v4848_v63 = vld [vmem:[%s7402_s2 + $0x604] ss:$8 sps:$4 sm:$0xff]  }
 0x103   : > { %2323 = vmatpush1.bf16.msra.mxu0 %v4732_v52  ;;  %v4816_v52 = vld [vmem:[%s7402_s2 + $0x5b0] ss:$8 sps:$4 sm:$0xff]  }
 0x104   : > { %2324 = vmatprep.subr.bf16.mxu0 %v4737_v55  ;;  %v4822_v55 = vld [vmem:[%s7402_s2 + $0x5c0] ss:$8 sps:$4 sm:$0xff]  }
 0x105   : > { %2198 = vmatpush1.bf16.msra.mxu1 %v4921_v2  ;;  %v4987_v2 = vld [vmem:[%s7402_s2 + $0x900] ss:$8 sps:$4 sm:$0xff]  }
 0x106   : > { %2199 = vmatprep.subr.bf16.mxu1 %v4929_v18  ;;  %v4854_v18 = vld [vmem:[%s7402_s2 + $0x614] ss:$8 sps:$4 sm:$0xff]  }
 0x107   : > { %2325 = vmatpush1.bf16.msra.mxu0 %v4735_v57  ;;  %v4828_v57 = vld [vmem:[%s7402_s2 + $0x5d0] ss:$8 sps:$4 sm:$0xff]  }
 0x108   : > { %2326 = vmatprep.subr.bf16.mxu0 %v4740_v59  ;;  %v4834_v59 = vld [vmem:[%s7402_s2 + $0x5e0] ss:$8 sps:$4 sm:$0xff]  }
 0x109   : > { %2200 = vmatpush1.bf16.msra.mxu1 %v4927_v10  ;;  %v4993_v10 = vld [vmem:[%s7402_s2 + $0x910] ss:$8 sps:$4 sm:$0xff]  }
 0x10a   : > { %2201 = vmatprep.subr.bf16.mxu1 %v4935_v21  ;;  %v5001_v21 = vld [vmem:[%s7402_s2 + $0x924] ss:$8 sps:$4 sm:$0xff]  }
 0x10b   : > { %2327 = vmatpush1.bf16.msra.mxu0 %v4738_v62  ;;  %v4840_v62 = vld [vmem:[%s7402_s2 + $0x5f0] ss:$8 sps:$4 sm:$0xff]  }
 0x10c   : > { %2328 = vmatprep.subr.bf16.mxu0 %v4743_v1  ;;  %v4846_v1 = vld [vmem:[%s7402_s2 + $0x600] ss:$8 sps:$4 sm:$0xff]  }
 0x10d   : > { %2202 = vmatpush1.bf16.msra.mxu1 %v4933_v38  ;;  %v5005_v38 = vld [vmem:[%s7402_s2 + $0x930] ss:$8 sps:$4 sm:$0xff]  }
 0x10f   : > { %2329 = vmatpush1.bf16.msra.mxu0 %v4741_v15  ;;  %v4989_v15 = vld [vmem:[%s7402_s2 + $0x904] ss:$8 sps:$4 sm:$0xff]  }
 0x110   : > { %2330 = vmatprep.subr.bf16.mxu0 %v4746_v9  ;;  %4322 = vmatmul.mubr.msk.bf16.vlgmr.msra.gmra.mrb[0].mxu1 %vm4316_vm13, %v4321_v29  ;;  %v4774_v29 = vld [vmem:[%s7402_s2 + $0x540] ss:$8 sps:$4 sm:$0xff]   ;;  %v4852_v9 = vld [vmem:[%s7402_s2 + $0x610] ss:$8 sps:$4 sm:$0xff]  }
 0x111   : > { %2746 = vmatprep.subr.bf16.mxu1 %v4989_v15  ;;  %v4924_v15 = vld [vmem:[%s7402_s2 + $0x6d0] ss:$8 sps:$4 sm:$0xff]  }
 0x112   : > { %2747 = vmatpush1.bf16.msra.mxu1 %v4987_v2  ;;  %v4926_v2 = vld [vmem:[%s7402_s2 + $0x6d4] ss:$8 sps:$4 sm:$0xff]  }
 0x113   : > { %2331 = vmatpush1.bf16.msra.mxu0 %v4744_v20  ;;  %v4995_v20 = vld [vmem:[%s7402_s2 + $0x914] ss:$8 sps:$4 sm:$0xff]  }
 0x114   : > { %2343 = vmatprep.subr.bf16.mxu0 %v4752_v33  ;;  %2748 = vmatprep.subr.bf16.mxu1 %v4995_v20  ;;  %v4864_v33 = vld [vmem:[%s7402_s2 + $0x630] ss:$8 sps:$4 sm:$0xff]   ;;  %v4930_v20 = vld [vmem:[%s7402_s2 + $0x6e0] ss:$8 sps:$4 sm:$0xff]  }
 0x116   : > { %2333 = vmatmul.mubr.bf16.vlgmr.msra.gmra.mrb[0].mxu0 %v329_v31  ;;  %2749 = vmatpush1.bf16.msra.mxu1 %v4993_v10  ;;  %v4870_v31 = vld [vmem:[%s7402_s2 + $0x640] ss:$8 sps:$4 sm:$0xff]   ;;  %v4932_v10 = vld [vmem:[%s7402_s2 + $0x6e4] ss:$8 sps:$4 sm:$0xff]  }
 0x117   : > { %2344 = vmatpush1.bf16.msra.mxu0 %v4750_v41  ;;  %4337 = vmatprep.mubr.msk.bf16.mxu0 %vm5526_vm8, %v4336_v35  ;;  %v4786_v35 = vld [vmem:[%s7402_s2 + $0x560] ss:$8 sps:$4 sm:$0xff]   ;;  %v5013_v41 = vld [vmem:[%s7402_s2 + $0x944] ss:$8 sps:$4 sm:$0xff]  }
 0x118   : > { %2345 = vmatprep.subr.bf16.mxu0 %v4758_v12  ;;  %2750 = vmatprep.subr.bf16.mxu1 %v5001_v21  ;;  %v4878_v12 = vld [vmem:[%s7402_s2 + $0x654] ss:$8 sps:$4 sm:$0xff]   ;;  %v4936_v21 = vld [vmem:[%s7402_s2 + $0x6f0] ss:$8 sps:$4 sm:$0xff]  }
 0x11b   : > { %2346 = vmatpush1.bf16.msra.mxu0 %v4756_v13  ;;  %v4876_v13 = vld [vmem:[%s7402_s2 + $0x650] ss:$8 sps:$4 sm:$0xff]  }
 0x11c   : > { %2347 = vmatprep.subr.bf16.mxu0 %v4764_v42  ;;  %v5017_v42 = vld [vmem:[%s7402_s2 + $0x950] ss:$8 sps:$4 sm:$0xff]  }
 0x11f   : > { %2348 = vmatpush1.bf16.msra.mxu0 %v4762_v43  ;;  %v5019_v43 = vld [vmem:[%s7402_s2 + $0x954] ss:$8 sps:$4 sm:$0xff]  }
 0x120   : > { %2349 = vmatprep.subr.bf16.mxu0 %v4770_v24  ;;  %v4884_v24 = vld [vmem:[%s7402_s2 + $0x664] ss:$8 sps:$4 sm:$0xff]  }
 0x123   : > { %2350 = vmatpush1.bf16.msra.mxu0 %v4768_v25  ;;  %v4882_v25 = vld [vmem:[%s7402_s2 + $0x660] ss:$8 sps:$4 sm:$0xff]  }
 0x124   : > { %2351 = vmatprep.subr.bf16.mxu0 %v4776_v26  ;;  %v5023_v26 = vld [vmem:[%s7402_s2 + $0x960] ss:$8 sps:$4 sm:$0xff]  }
 0x127   : > { %2352 = vmatpush1.bf16.msra.mxu0 %v4774_v29  ;;  %v5025_v29 = vld [vmem:[%s7402_s2 + $0x964] ss:$8 sps:$4 sm:$0xff]  }
 0x128   : > { %2353 = vmatprep.subr.bf16.mxu0 %v4782_v11  ;;  %v4890_v11 = vld [vmem:[%s7402_s2 + $0x674] ss:$8 sps:$4 sm:$0xff]  }
 0x12b   : > { %2354 = vmatpush1.bf16.msra.mxu0 %v4780_v14  ;;  %v4888_v14 = vld [vmem:[%s7402_s2 + $0x670] ss:$8 sps:$4 sm:$0xff]  }
 0x12c   : > { %2355 = vmatprep.subr.bf16.mxu0 %v4788_v28  ;;  %v5029_v28 = vld [vmem:[%s7402_s2 + $0x970] ss:$8 sps:$4 sm:$0xff]  }
 0x12f   : > { %2356 = vmatpush1.bf16.msra.mxu0 %v4786_v35  ;;  %v5031_v35 = vld [vmem:[%s7402_s2 + $0x974] ss:$8 sps:$4 sm:$0xff]  }
 0x130   : > { %2357 = vmatprep.subr.bf16.mxu0 %v4794_v44  ;;  %v4896_v44 = vld [vmem:[%s7402_s2 + $0x684] ss:$8 sps:$4 sm:$0xff]  }
 0x133   : > { %2358 = vmatpush1.bf16.msra.mxu0 %v4792_v45  ;;  %v4894_v45 = vld [vmem:[%s7402_s2 + $0x680] ss:$8 sps:$4 sm:$0xff]  }
 0x134   : > { %2359 = vmatprep.subr.bf16.mxu0 %v4800_v46  ;;  %v5035_v46 = vld [vmem:[%s7402_s2 + $0x980] ss:$8 sps:$4 sm:$0xff]  }
 0x137   : > { %2360 = vmatpush1.bf16.msra.mxu0 %v4798_v37  ;;  %v5037_v37 = vld [vmem:[%s7402_s2 + $0x984] ss:$8 sps:$4 sm:$0xff]  }
 0x138   : > { %2361 = vmatprep.subr.bf16.mxu0 %v4806_v39  ;;  %v4902_v39 = vld [vmem:[%s7402_s2 + $0x694] ss:$8 sps:$4 sm:$0xff]  }
 0x13b   : > { %2362 = vmatpush1.bf16.msra.mxu0 %v4804_v40  ;;  %v4900_v40 = vld [vmem:[%s7402_s2 + $0x690] ss:$8 sps:$4 sm:$0xff]  }
 0x13c   : > { %2363 = vmatprep.subr.bf16.mxu0 %v4812_v47  ;;  %v5041_v47 = vld [vmem:[%s7402_s2 + $0x990] ss:$8 sps:$4 sm:$0xff]  }
 0x13f   : > { %2364 = vmatpush1.bf16.msra.mxu0 %v4810_v50  ;;  %v5043_v50 = vld [vmem:[%s7402_s2 + $0x994] ss:$8 sps:$4 sm:$0xff]  }
 0x140   : > { %2365 = vmatprep.subr.bf16.mxu0 %v4818_v51  ;;  %v4908_v51 = vld [vmem:[%s7402_s2 + $0x6a4] ss:$8 sps:$4 sm:$0xff]  }
 0x143   : > { %2366 = vmatpush1.bf16.msra.mxu0 %v4816_v52  ;;  %v4906_v52 = vld [vmem:[%s7402_s2 + $0x6a0] ss:$8 sps:$4 sm:$0xff]  }
 0x144   : > { %2367 = vmatprep.subr.bf16.mxu0 %v4824_v54  ;;  %v5047_v54 = vld [vmem:[%s7402_s2 + $0x9a0] ss:$8 sps:$4 sm:$0xff]  }
 0x147   : > { %2368 = vmatpush1.bf16.msra.mxu0 %v4822_v55  ;;  %v5049_v55 = vld [vmem:[%s7402_s2 + $0x9a4] ss:$8 sps:$4 sm:$0xff]  }
 0x148   : > { %2369 = vmatprep.subr.bf16.mxu0 %v4830_v56  ;;  %v4914_v56 = vld [vmem:[%s7402_s2 + $0x6b4] ss:$8 sps:$4 sm:$0xff]  }
 0x14b   : > { %2370 = vmatpush1.bf16.msra.mxu0 %v4828_v57  ;;  %v4912_v57 = vld [vmem:[%s7402_s2 + $0x6b0] ss:$8 sps:$4 sm:$0xff]  }
 0x14c   : > { %2371 = vmatprep.subr.bf16.mxu0 %v4836_v58  ;;  %v5053_v58 = vld [vmem:[%s7402_s2 + $0x9b0] ss:$8 sps:$4 sm:$0xff]  }
 0x14f   : > { %2372 = vmatpush1.bf16.msra.mxu0 %v4834_v59  ;;  %v5055_v59 = vld [vmem:[%s7402_s2 + $0x9b4] ss:$8 sps:$4 sm:$0xff]  }
 0x150   : > { %2373 = vmatprep.subr.bf16.mxu0 %v4842_v60  ;;  %v4920_v60 = vld [vmem:[%s7402_s2 + $0x6c4] ss:$8 sps:$4 sm:$0xff]  }
 0x153   : > { %2374 = vmatpush1.bf16.msra.mxu0 %v4840_v62  ;;  %v4918_v62 = vld [vmem:[%s7402_s2 + $0x6c0] ss:$8 sps:$4 sm:$0xff]  }
 0x154   : > { %2386 = vmatprep.subr.bf16.mxu0 %v4848_v63  ;;  %v5059_v63 = vld [vmem:[%s7402_s2 + $0x9c0] ss:$8 sps:$4 sm:$0xff]  }
 0x156   : > { %2376 = vmatmul.mubr.bf16.vlgmr.msra.gmra.mrb[0].mxu0 %v347_v34  ;;  %v4999_v34 = vld [vmem:[%s7402_s2 + $0x920] ss:$8 sps:$4 sm:$0xff]  }
 0x157   : > { %2387 = vmatpush1.bf16.msra.mxu0 %v4846_v1  ;;  %2418 = vmatprep.mubr.bf16.mxu0 %v379_v32  ;;  %v5011_v32 = vld [vmem:[%s7402_s2 + $0x940] ss:$8 sps:$4 sm:$0xff]   ;;  %v5061_v1 = vld [vmem:[%s7402_s2 + $0x9c4] ss:$8 sps:$4 sm:$0xff]  }
 0x158   : > { %2388 = vmatprep.subr.bf16.mxu0 %v4854_v18  ;;  %2751 = vmatpush1.bf16.msra.mxu1 %v4999_v34  ;;  %v5065_v18 = vld [vmem:[%s7402_s2 + $0x9d0] ss:$8 sps:$4 sm:$0xff]   ;;  %v4938_v34 = vld [vmem:[%s7402_s2 + $0x6f4] ss:$8 sps:$4 sm:$0xff]  }
 0x159   : > { %2752 = vmatprep.subr.bf16.mxu1 %v5007_v0  ;;  %v5079_v0 = vld [vmem:[%s7402_s2 + $0x9f4] ss:$8 sps:$4 sm:$0xff]  }
 0x15b   : > { %2389 = vmatpush1.bf16.msra.mxu0 %v4852_v9  ;;  %v5067_v9 = vld [vmem:[%s7402_s2 + $0x9d4] ss:$8 sps:$4 sm:$0xff]  }
 0x15c   : > { %2390 = vmatprep.subr.bf16.mxu0 %v4860_v23  ;;  %2753 = vmatpush1.bf16.msra.mxu1 %v5005_v38  ;;  %v5071_v23 = vld [vmem:[%s7402_s2 + $0x9e0] ss:$8 sps:$4 sm:$0xff]   ;;  %v5077_v38 = vld [vmem:[%s7402_s2 + $0x9f0] ss:$8 sps:$4 sm:$0xff]  }
 0x15d   : > { %2754 = vmatprep.subr.bf16.mxu1 %v5013_v41 }
 0x15f   : > { %2391 = vmatpush1.bf16.msra.mxu0 %v4858_v27  ;;  %v5073_v27 = vld [vmem:[%s7402_s2 + $0x9e4] ss:$8 sps:$4 sm:$0xff]  }
 0x160   : > { %2392 = vmatprep.subr.bf16.mxu0 %v4866_v22  ;;  %2755 = vmatpush1.bf16.msra.mxu1 %v5011_v32  ;;  %v6327_v22 = vpop.permute.xlu1 %4599 }
 0x161   : > { %2756 = vmatprep.subr.bf16.mxu1 %v5019_v43  ;;  %v4601_v32 = vunpack.i.l.bf16 %v6327_v22 }
 0x163   : > { %2393 = vmatpush1.bf16.msra.mxu0 %v4864_v33  ;;  %v6329_v33 = vpop.permute.xlu0 %4594 }
 0x164   : > { %2394 = vmatprep.subr.bf16.mxu0 %v4872_v30  ;;  %2757 = vmatpush1.bf16.msra.mxu1 %v5017_v42  ;;  %v4941_v30 = vld [vmem:[%s7402_s2 + $0x704] ss:$8 sps:$4 sm:$0xff]   ;;  %v4597_v41 = vunpack.i.h.bf16 %v6329_v33  ;;  %v6348_v42 = vld [vmem:[%s6322_s24 + $0x18] sm:$0xff] }
 0x165   : > { %2758 = vmatprep.subr.bf16.mxu1 %v5025_v29 }
 0x167   : > { %2395 = vmatpush1.bf16.msra.mxu0 %v4870_v31  ;;  %v4602_v31 = vunpack.i.h.bf16 %v6327_v22  ;;  %v4996_v22 = vld [vmem:[%s7402_s2 + $0x810] ss:$8 sps:$4 sm:$0xff]  }
 0x168   : > { %2396 = vmatprep.subr.bf16.mxu0 %v4878_v12  ;;  %2759 = vmatpush1.bf16.msra.mxu1 %v5023_v26  ;;  %v4596_v12 = vunpack.i.l.bf16 %v6329_v33  ;;  %v6358_v26 = vld [vmem:[%s6322_s24 + $0x10] sm:$0xff] }
 0x169   : > { %2760 = vmatprep.subr.bf16.mxu1 %v5031_v35  ;;  %v6366_v29 = vsel %vm300_vm7, %v4597_v41, %v4602_v31  ;;  %v5010_v33 = vld [vmem:[%s7402_s2 + $0x834] ss:$8 sps:$4 sm:$0xff]  }
 0x16b   : > { %2397 = vmatpush1.bf16.msra.mxu0 %v4876_v13  ;;  %v6345_v13 = vld [vmem:[%s6322_s24 + $0x8] sm:$0xff] }
 0x16c   : > { %2398 = vmatprep.subr.bf16.mxu0 %v4884_v24  ;;  %2761 = vmatpush1.bf16.msra.mxu1 %v5029_v28  ;;  %v2549_v43 = vmax.f32 %v6345_v13, 0.0  ;;  %v2551_v24 = vmax.f32 %v6348_v42, 0.0  ;;  %v4939_v28 = vld [vmem:[%s7402_s2 + $0x700] ss:$8 sps:$4 sm:$0xff]  }
 0x16d   : > { %2762 = vmatprep.subr.bf16.mxu1 %v5037_v37 }
 0x16f   : > { %2399 = vmatpush1.bf16.msra.mxu0 %v4882_v25  ;;  %v6355_v25 = vld [vmem:[%s6322_s24] sm:$0xff] }
 0x170   : > { %2400 = vmatprep.subr.bf16.mxu0 %v4890_v11  ;;  %2763 = vmatpush1.bf16.msra.mxu1 %v5035_v46  ;;  %v6374_v11 = vsel %vm300_vm7, %v4596_v12, %v4601_v32  ;;  %v4944_v46 = vld [vmem:[%s7402_s2 + $0x714] ss:$8 sps:$4 sm:$0xff]  }
 0x171   : > { %2764 = vmatprep.subr.bf16.mxu1 %v5043_v50  ;;  %v398_v35 = vpack.c.bf16 %v6366_v29, %v6374_v11  ;;  %v5091_v50 = vld [vmem:[%s7402_s2 + $0xa24] ss:$8 sps:$4 sm:$0xff]   ;;  %v5122_v29 = vld [vmem:[%s7402_s2 + $0xad0] ss:$8 sps:$4 sm:$0xff]  }
 0x173   : > { %2401 = vmatpush1.bf16.msra.mxu0 %v4888_v14  ;;  %v4345_v14 = vpack.c.bf16 %v5477_v6, %v5473_v5  ;;  %v2550_v6 = vmax.f32 %v6358_v26, 0.0  ;;  %v5020_v5 = vld [vmem:[%s7402_s2 + $0x850] ss:$8 sps:$4 sm:$0xff]  }
 0x174   : > { %2402 = vmatprep.subr.bf16.mxu0 %v4896_v44  ;;  %2765 = vmatpush1.bf16.msra.mxu1 %v5041_v47  ;;  %v2553_v44 = vpack.c.bf16 %v2551_v24, %v2549_v43  ;;  %v4942_v47 = vld [vmem:[%s7402_s2 + $0x710] ss:$8 sps:$4 sm:$0xff]   ;;  %v5107_v43 = vld [vmem:[%s7402_s2 + $0xa80] ss:$8 sps:$4 sm:$0xff]  }
 0x175   : > { %2766 = vmatprep.subr.bf16.mxu1 %v5049_v55  ;;  %v5094_v55 = vld [vmem:[%s7402_s2 + $0xa34] ss:$8 sps:$4 sm:$0xff]   ;;  %v4966_v24 = vld [vmem:[%s7402_s2 + $0x790] ss:$8 sps:$4 sm:$0xff]  }
 0x176   : > { %2778 = vmatprep.mubr.bf16.mxu1 %v2553_v44  ;;  %v5110_v44 = vld [vmem:[%s7402_s2 + $0xa90] ss:$8 sps:$4 sm:$0xff]  }
 0x177   : > { %2403 = vmatpush1.bf16.msra.mxu0 %v4894_v45  ;;  %v2548_v45 = vmax.f32 %v6355_v25, 0.0 }
 0x178   : > { %2404 = vmatprep.subr.bf16.mxu0 %v4902_v39  ;;  %2767 = vmatpush1.bf16.msra.mxu1 %v5047_v54  ;;  %v5083_v39 = vld [vmem:[%s7402_s2 + $0xa00] ss:$8 sps:$4 sm:$0xff]   ;;  %v4948_v54 = vld [vmem:[%s7402_s2 + $0x730] ss:$8 sps:$4 sm:$0xff]  }
 0x179   : > { %2768 = vmatprep.subr.bf16.mxu1 %v5055_v59  ;;  %v2552_v37 = vpack.c.bf16 %v2550_v6, %v2548_v45  ;;  %v5097_v59 = vld [vmem:[%s7402_s2 + $0xa44] ss:$8 sps:$4 sm:$0xff]   ;;  %v4969_v45 = vld [vmem:[%s7402_s2 + $0x7a0] ss:$8 sps:$4 sm:$0xff]   ;;  %v4974_v6 = vld [vmem:[%s7402_s2 + $0x7b4] ss:$8 sps:$4 sm:$0xff]  }
 0x17b   : > { %2405 = vmatpush1.bf16.msra.mxu0 %v4900_v40  ;;  %v5085_v40 = vld [vmem:[%s7402_s2 + $0xa04] ss:$8 sps:$4 sm:$0xff]  }
 0x17c   : > { %2406 = vmatprep.subr.bf16.mxu0 %v4908_v51  ;;  %2769 = vmatpush1.bf16.msra.mxu1 %v5053_v58  ;;  %v4950_v51 = vld [vmem:[%s7402_s2 + $0x734] ss:$8 sps:$4 sm:$0xff]   ;;  %v4951_v58 = vld [vmem:[%s7402_s2 + $0x740] ss:$8 sps:$4 sm:$0xff]  }
 0x17d   : > { %2770 = vmatprep.subr.bf16.mxu1 %v5061_v1  ;;  %v5100_v1 = vld [vmem:[%s7402_s2 + $0xa54] ss:$8 sps:$4 sm:$0xff]  }
 0x17f   : > { %2407 = vmatpush1.bf16.msra.mxu0 %v4906_v52  ;;  %v5089_v52 = vld [vmem:[%s7402_s2 + $0xa20] ss:$8 sps:$4 sm:$0xff]  }
 0x180   : > { %2408 = vmatprep.subr.bf16.mxu0 %v4914_v56  ;;  %2771 = vmatpush1.bf16.msra.mxu1 %v5059_v63  ;;  %v4953_v56 = vld [vmem:[%s7402_s2 + $0x744] ss:$8 sps:$4 sm:$0xff]   ;;  %v4954_v63 = vld [vmem:[%s7402_s2 + $0x750] ss:$8 sps:$4 sm:$0xff]  }
 0x181   : > { %2772 = vmatprep.subr.bf16.mxu1 %v5067_v9  ;;  %v5103_v9 = vld [vmem:[%s7402_s2 + $0xa64] ss:$8 sps:$4 sm:$0xff]  }
 0x183   : > { %2409 = vmatpush1.bf16.msra.mxu0 %v4912_v57  ;;  %v5092_v57 = vld [vmem:[%s7402_s2 + $0xa30] ss:$8 sps:$4 sm:$0xff]  }
 0x184   : > { %2410 = vmatprep.subr.bf16.mxu0 %v4920_v60  ;;  %2773 = vmatpush1.bf16.msra.mxu1 %v5065_v18  ;;  %v4956_v60 = vld [vmem:[%s7402_s2 + $0x754] ss:$8 sps:$4 sm:$0xff]   ;;  %v4957_v18 = vld [vmem:[%s7402_s2 + $0x760] ss:$8 sps:$4 sm:$0xff]  }
 0x185   : > { %2774 = vmatprep.subr.bf16.mxu1 %v5073_v27  ;;  %v5106_v27 = vld [vmem:[%s7402_s2 + $0xa74] ss:$8 sps:$4 sm:$0xff]  }
 0x187   : > { %2411 = vmatpush1.bf16.msra.mxu0 %v4918_v62  ;;  %v5095_v62 = vld [vmem:[%s7402_s2 + $0xa40] ss:$8 sps:$4 sm:$0xff]  }
 0x188   : > { %2412 = vmatprep.subr.bf16.mxu0 %v4926_v2  ;;  %2775 = vmatpush1.bf16.msra.mxu1 %v5071_v23  ;;  %v4959_v2 = vld [vmem:[%s7402_s2 + $0x764] ss:$8 sps:$4 sm:$0xff]   ;;  %v4960_v23 = vld [vmem:[%s7402_s2 + $0x770] ss:$8 sps:$4 sm:$0xff]  }
 0x189   : > { %2776 = vmatprep.subr.bf16.mxu1 %v5079_v0  ;;  %v5109_v0 = vld [vmem:[%s7402_s2 + $0xa84] ss:$8 sps:$4 sm:$0xff]  }
 0x18b   : > { %2413 = vmatpush1.bf16.msra.mxu0 %v4924_v15  ;;  %v5098_v15 = vld [vmem:[%s7402_s2 + $0xa50] ss:$8 sps:$4 sm:$0xff]  }
 0x18c   : > { %2414 = vmatprep.subr.bf16.mxu0 %v4932_v10  ;;  %2777 = vmatpush1.bf16.msra.mxu1 %v5077_v38  ;;  %v4962_v10 = vld [vmem:[%s7402_s2 + $0x774] ss:$8 sps:$4 sm:$0xff]   ;;  %v4963_v38 = vld [vmem:[%s7402_s2 + $0x780] ss:$8 sps:$4 sm:$0xff]  }
 0x18d   : > { %3337 = vmatprep.subr.bf16.mxu1 %v5085_v40  ;;  %v5118_v40 = vld [vmem:[%s7402_s2 + $0xab4] ss:$8 sps:$4 sm:$0xff]  }
 0x18f   : > { %2415 = vmatpush1.bf16.msra.mxu0 %v4930_v20  ;;  %2779 = vmatmul.mubr.bf16.vlgmr.msra.gmra.mrb[4].mxu1 %v2552_v37  ;;  %v5101_v20 = vld [vmem:[%s7402_s2 + $0xa60] ss:$8 sps:$4 sm:$0xff]  }
 0x190   : > { %2416 = vmatprep.subr.bf16.mxu0 %v4938_v34  ;;  %3338 = vmatpush1.bf16.msra.mxu1 %v5083_v39  ;;  %v4965_v34 = vld [vmem:[%s7402_s2 + $0x784] ss:$8 sps:$4 sm:$0xff]   ;;  %v5113_v37 = vld [vmem:[%s7402_s2 + $0xaa0] ss:$8 sps:$4 sm:$0xff]   ;;  %v4972_v39 = vld [vmem:[%s7402_s2 + $0x7b0] ss:$8 sps:$4 sm:$0xff]  }
 0x191   : > { %3339 = vmatprep.subr.bf16.mxu1 %v5088_v48  ;;  %v5116_v48 = vld [vmem:[%s7402_s2 + $0xab0] ss:$8 sps:$4 sm:$0xff]  }
 0x193   : > { %2417 = vmatpush1.bf16.msra.mxu0 %v4936_v21  ;;  %v5104_v21 = vld [vmem:[%s7402_s2 + $0xa70] ss:$8 sps:$4 sm:$0xff]  }
 0x194   : > { %2429 = vmatprep.subr.bf16.mxu0 %v4941_v30  ;;  %v4968_v30 = vld [vmem:[%s7402_s2 + $0x794] ss:$8 sps:$4 sm:$0xff]  }
 0x196   : > { %4342 = vmatmul.mubr.msk.bf16.vlgmr.msra.gmra.mrb[0].mxu0 %vm5788_vm10, %v4341_v53  ;;  %v5086_v53 = vld [vmem:[%s7402_s2 + $0xa10] ss:$8 sps:$4 sm:$0xff]  }
 0x197   : > { %2430 = vmatpush1.bf16.msra.mxu0 %v4939_v28  ;;  %4346 = vmatprep.mubr.msk.bf16.mxu0 %vm6391_vm15, %v4345_v14  ;;  %v5112_v14 = vld [vmem:[%s7402_s2 + $0xa94] ss:$8 sps:$4 sm:$0xff]   ;;  %v4971_v28 = vld [vmem:[%s7402_s2 + $0x7a4] ss:$8 sps:$4 sm:$0xff]  }
 0x198   : > { %2431 = vmatprep.subr.bf16.mxu0 %v4944_v46  ;;  %3340 = vmatpush1.bf16.msra.mxu1 %v5086_v53  ;;  %v5115_v46 = vld [vmem:[%s7402_s2 + $0xaa4] ss:$8 sps:$4 sm:$0xff]   ;;  %v4980_v53 = vld [vmem:[%s7402_s2 + $0x7d4] ss:$8 sps:$4 sm:$0xff]  }
 0x199   : > { %3341 = vmatprep.subr.bf16.mxu1 %v5091_v50  ;;  %v4983_v50 = vld [vmem:[%s7402_s2 + $0x7e4] ss:$8 sps:$4 sm:$0xff]  }
 0x19b   : > { %2432 = vmatpush1.bf16.msra.mxu0 %v4942_v47  ;;  %v4977_v47 = vld [vmem:[%s7402_s2 + $0x7c4] ss:$8 sps:$4 sm:$0xff]  }
 0x19c   : > { %2433 = vmatprep.subr.bf16.mxu0 %v4947_v49  ;;  %3342 = vmatpush1.bf16.msra.mxu1 %v5089_v52  ;;  %v4975_v49 = vld [vmem:[%s7402_s2 + $0x7c0] ss:$8 sps:$4 sm:$0xff]   ;;  %v4986_v52 = vld [vmem:[%s7402_s2 + $0x7f4] ss:$8 sps:$4 sm:$0xff]  }
 0x19d   : > { %3343 = vmatprep.subr.bf16.mxu1 %v5094_v55  ;;  %v4992_v55 = vld [vmem:[%s7402_s2 + $0x804] ss:$8 sps:$4 sm:$0xff]  }
 0x19f   : > { %2434 = vmatpush1.bf16.msra.mxu0 %v4945_v61  ;;  %v4978_v61 = vld [vmem:[%s7402_s2 + $0x7d0] ss:$8 sps:$4 sm:$0xff]  }
 0x1a0   : > { %2435 = vmatprep.subr.bf16.mxu0 %v4950_v51  ;;  %3344 = vmatpush1.bf16.msra.mxu1 %v5092_v57  ;;  %v4981_v51 = vld [vmem:[%s7402_s2 + $0x7e0] ss:$8 sps:$4 sm:$0xff]   ;;  %v392_v57 = vsel %vm300_vm7, %v4601_v32, %v4596_v12  ;;  %v5016_v32 = vld [vmem:[%s7402_s2 + $0x844] ss:$8 sps:$4 sm:$0xff]   ;;  %v5022_v12 = vld [vmem:[%s7402_s2 + $0x854] ss:$8 sps:$4 sm:$0xff]  }
 0x1a1   : > { %3345 = vmatprep.subr.bf16.mxu1 %v5097_v59  ;;  %v4990_v59 = vld [vmem:[%s7402_s2 + $0x800] ss:$8 sps:$4 sm:$0xff]  }
 0x1a3   : > { %2436 = vmatpush1.bf16.msra.mxu0 %v4948_v54  ;;  %v4984_v54 = vld [vmem:[%s7402_s2 + $0x7f0] ss:$8 sps:$4 sm:$0xff]  }
 0x1a4   : > { %2437 = vmatprep.subr.bf16.mxu0 %v4953_v56  ;;  %3346 = vmatpush1.bf16.msra.mxu1 %v5095_v62  ;;  %v393_v56 = vsel %vm300_vm7, %v4602_v31, %v4597_v41  ;;  %v4998_v31 = vld [vmem:[%s7402_s2 + $0x814] ss:$8 sps:$4 sm:$0xff]   ;;  %v5014_v41 = vld [vmem:[%s7402_s2 + $0x840] ss:$8 sps:$4 sm:$0xff]   ;;  %v5028_v62 = vld [vmem:[%s7402_s2 + $0x864] ss:$8 sps:$4 sm:$0xff]  }
 0x1a5   : > { %3347 = vmatprep.subr.bf16.mxu1 %v5100_v1 }
 0x1a7   : > { %2438 = vmatpush1.bf16.msra.mxu0 %v4951_v58  ;;  %v4349_v58 = vpack.c.bf16 %v5485_v8, %v5481_v7  ;;  %v5004_v7 = vld [vmem:[%s7402_s2 + $0x824] ss:$8 sps:$4 sm:$0xff]   ;;  %v5002_v8 = vld [vmem:[%s7402_s2 + $0x820] ss:$8 sps:$4 sm:$0xff]  }
 0x1a8   : > { %2439 = vmatprep.subr.bf16.mxu0 %v4956_v60  ;;  %3348 = vmatpush1.bf16.msra.mxu1 %v5098_v15  ;;  %v4354_v60 = vpack.c.bf16 %v393_v56, %v392_v57  ;;  %v4390_v57 = vld [vmem:[%s7403_s3 + $0x3] ss:$8 sm:$0x3] }
 0x1a9   : > { %3349 = vmatprep.subr.bf16.mxu1 %v5103_v9 }
 0x1ab   : > { %2440 = vmatpush1.bf16.msra.mxu0 %v4954_v63  ;;  %v5026_v63 = vld [vmem:[%s7402_s2 + $0x860] ss:$8 sps:$4 sm:$0xff]  }
 0x1ac   : > { %2441 = vmatprep.subr.bf16.mxu0 %v4959_v2  ;;  %3350 = vmatpush1.bf16.msra.mxu1 %v5101_v20  ;;  %v5034_v2 = vld [vmem:[%s7402_s2 + $0x874] ss:$8 sps:$4 sm:$0xff]   ;;  %v5040_v20 = vld [vmem:[%s7402_s2 + $0x884] ss:$8 sps:$4 sm:$0xff]  }
 0x1ad   : > { %3351 = vmatprep.subr.bf16.mxu1 %v5106_v27  ;;  %v5046_v27 = vld [vmem:[%s7402_s2 + $0x894] ss:$8 sps:$4 sm:$0xff]  }
 0x1af   : > { %2442 = vmatpush1.bf16.msra.mxu0 %v4957_v18 }
 0x1b0   : > { %2443 = vmatprep.subr.bf16.mxu0 %v4962_v10  ;;  %3352 = vmatpush1.bf16.msra.mxu1 %v5104_v21  ;;  %v5032_v10 = vld [vmem:[%s7402_s2 + $0x870] ss:$8 sps:$4 sm:$0xff]   ;;  %v5052_v21 = vld [vmem:[%s7402_s2 + $0x8a4] ss:$8 sps:$4 sm:$0xff]  }
 0x1b1   : > { %3353 = vmatprep.subr.bf16.mxu1 %v5109_v0  ;;  %v5058_v0 = vld [vmem:[%s7402_s2 + $0x8b4] ss:$8 sps:$4 sm:$0xff]  }
 0x1b3   : > { %2444 = vmatpush1.bf16.msra.mxu0 %v4960_v23  ;;  %v5038_v23 = vld [vmem:[%s7402_s2 + $0x880] ss:$8 sps:$4 sm:$0xff]  }
 0x1b4   : > { %2445 = vmatprep.subr.bf16.mxu0 %v4965_v34  ;;  %3354 = vmatpush1.bf16.msra.mxu1 %v5107_v43  ;;  %v5044_v34 = vld [vmem:[%s7402_s2 + $0x890] ss:$8 sps:$4 sm:$0xff]   ;;  %v5064_v43 = vld [vmem:[%s7402_s2 + $0x8c4] ss:$8 sps:$4 sm:$0xff]  }
 0x1b5   : > { %3355 = vmatprep.subr.bf16.mxu1 %v5112_v14  ;;  %v5070_v14 = vld [vmem:[%s7402_s2 + $0x8d4] ss:$8 sps:$4 sm:$0xff]  }
 0x1b7   : > { %2446 = vmatpush1.bf16.msra.mxu0 %v4963_v38  ;;  %v5050_v38 = vld [vmem:[%s7402_s2 + $0x8a0] ss:$8 sps:$4 sm:$0xff]  }
 0x1b8   : > { %2447 = vmatprep.subr.bf16.mxu0 %v4968_v30  ;;  %3356 = vmatpush1.bf16.msra.mxu1 %v5110_v44  ;;  %v5056_v30 = vld [vmem:[%s7402_s2 + $0x8b0] ss:$8 sps:$4 sm:$0xff]   ;;  %v5076_v44 = vld [vmem:[%s7402_s2 + $0x8e4] ss:$8 sps:$4 sm:$0xff]  }
 0x1b9   : > { %3357 = vmatprep.subr.bf16.mxu1 %v5115_v46  ;;  %v5082_v46 = vld [vmem:[%s7402_s2 + $0x8f4] ss:$8 sps:$4 sm:$0xff]  }
 0x1bb   : > { %2448 = vmatpush1.bf16.msra.mxu0 %v4966_v24  ;;  %v5062_v24 = vld [vmem:[%s7402_s2 + $0x8c0] ss:$8 sps:$4 sm:$0xff]  }
 0x1bc   : > { %2449 = vmatprep.subr.bf16.mxu0 %v4971_v28  ;;  %3358 = vmatpush1.bf16.msra.mxu1 %v5113_v37  ;;  %v5068_v28 = vld [vmem:[%s7402_s2 + $0x8d0] ss:$8 sps:$4 sm:$0xff]   ;;  %v5121_v37 = vld [vmem:[%s7402_s2 + $0xac4] ss:$8 sps:$4 sm:$0xff]  }
 0x1bd   : > { %3359 = vmatprep.subr.bf16.mxu1 %v5118_v40 }
 0x1bf   : > { %2450 = vmatpush1.bf16.msra.mxu0 %v4969_v45  ;;  %v5074_v45 = vld [vmem:[%s7402_s2 + $0x8e0] ss:$8 sps:$4 sm:$0xff]  }
 0x1c0   : > { %2451 = vmatprep.subr.bf16.mxu0 %v4974_v6  ;;  %3360 = vmatpush1.bf16.msra.mxu1 %v5116_v48  ;;  %v5080_v6 = vld [vmem:[%s7402_s2 + $0x8f0] ss:$8 sps:$4 sm:$0xff]   ;;  %v5124_v48 = vld [vmem:[%s7402_s2 + $0xad4] ss:$8 sps:$4 sm:$0xff]  }
 0x1c1   : > { %3361 = vmatprep.subr.bf16.mxu1 %v5121_v37 }
 0x1c3   : > { %2452 = vmatpush1.bf16.msra.mxu0 %v4972_v39  ;;  %v5119_v39 = vld [vmem:[%s7402_s2 + $0xac0] ss:$8 sps:$4 sm:$0xff]  }
 0x1c4   : > { %2453 = vmatprep.subr.bf16.mxu0 %v4977_v47  ;;  %3362 = vmatpush1.bf16.msra.mxu1 %v5119_v39 }
 0x1c5   : > { %3363 = vmatprep.subr.bf16.mxu1 %v5124_v48 }
 0x1c7   : > { %2454 = vmatpush1.bf16.msra.mxu0 %v4975_v49 }
 0x1c8   : > { %2455 = vmatprep.subr.bf16.mxu0 %v4980_v53  ;;  %3364 = vmatpush1.bf16.msra.mxu1 %v5122_v29  ;;  %v5125_v53 = vld [vmem:[%s7402_s2 + $0xae0] ss:$8 sps:$4 sm:$0xff]  }
 0x1cb   : > { %2456 = vmatpush1.bf16.msra.mxu0 %v4978_v61  ;;  %v5128_v61 = vld [vmem:[%s7402_s2 + $0xaf0] ss:$8 sps:$4 sm:$0xff]  }
 0x1cc   : > { %2457 = vmatprep.subr.bf16.mxu0 %v4983_v50  ;;  %v5130_v50 = vld [vmem:[%s7402_s2 + $0xaf4] ss:$8 sps:$4 sm:$0xff]  }
 0x1cf   : > { %2458 = vmatpush1.bf16.msra.mxu0 %v4981_v51  ;;  %v5133_v51 = vld [vmem:[%s7402_s2 + $0xb04] ss:$8 sps:$4 sm:$0xff]  }
 0x1d0   : > { %2459 = vmatprep.subr.bf16.mxu0 %v4986_v52  ;;  %v6715_v52 = vsub.s32 0, %v5286_v3 }
 0x1d3   : > { %2460 = vmatpush1.bf16.msra.mxu0 %v4984_v54  ;;  %v4389_v54 = vld [vmem:[%s7403_s3 + $0x2] ss:$8 sm:$0x3] }
 0x1d4   : > { %2472 = vmatprep.subr.bf16.mxu0 %v4992_v55  ;;  %v6721_v55 = vsub.s32 1, %v5286_v3  ;;  %v2795_v56 = vrot.slane %v4389_v54, %v6715_v52 }
 0x1d6   : > { %4350 = vmatmul.mubr.msk.bf16.vlgmr.msra.gmra.mrb[0].mxu0 %vm6391_vm15, %v4349_v58  ;;  %v2515_v58 = vld [vmem:[%s7403_s3] ss:$8 sm:$0x3] }
 0x1d7   : > { %2473 = vmatpush1.bf16.msra.mxu0 %v4990_v59  ;;  %4355 = vmatprep.mubr.msk.bf16.mxu0 %vm5526_vm8, %v4354_v60  ;;  %v2799_v59 = vrot.slane %v4389_v54, %v6721_v55  ;;  %v4356_v60 = vld [vmem:[%s7403_s3 + $0x1] ss:$8 sm:$0x3] }
 0x1d8   : > { %2474 = vmatprep.subr.bf16.mxu0 %v4998_v31  ;;  %v5137_v54 = vld [vmem:[%s7402_s2 + $0xb20] ss:$8 sps:$4 sm:$0xff]  }
 0x1db   : > { %2475 = vmatpush1.bf16.msra.mxu0 %v4996_v22  ;;  %v2812_v22 = vrot.slane %v4390_v57, %v6715_v52 }
 0x1dc   : > { %2476 = vmatprep.subr.bf16.mxu0 %v5004_v7  ;;  %v2520_v7 = vrot.slane %v2515_v58, %v6715_v52 }
 0x1df   : > { %2477 = vmatpush1.bf16.msra.mxu0 %v5002_v8 }
 0x1e0   : > { %2478 = vmatprep.subr.bf16.mxu0 %v5010_v33 }
 0x1e3   : > { %2479 = vmatpush1.bf16.msra.mxu0 %v5008_v36  ;;  %v6622_v1 = vpop.f32.mrb[0].mxu1  ;;  %v2816_v36 = vrot.slane %v4390_v57, %v6721_v55  ;;  %v5142_v57 = vld [vmem:[%s7402_s2 + $0xb34] ss:$8 sps:$4 sm:$0xff]  }
 0x1e4   : > { %2480 = vmatprep.subr.bf16.mxu0 %v5016_v32  ;;  %v6627_v15 = vpop.f32.mrb[1].mxu1  ;;  %v2524_v32 = vrot.slane %v2515_v58, %v6721_v55 }
 0x1e5   : > { %v6629_v18 = vpop.f32.mrb[2].mxu1 }
 0x1e6   : > { %v6631_v9 = vpop.f32.mrb[3].mxu1 }
 0x1e7   : > { %2481 = vmatpush1.bf16.msra.mxu0 %v5014_v41 }
 0x1e8   : > { %2482 = vmatprep.subr.bf16.mxu0 %v5022_v12  ;;  %v2537_v12 = vrot.slane %v4356_v60, %v6715_v52 }
 0x1eb   : > { %2483 = vmatpush1.bf16.msra.mxu0 %v5020_v5 }
 0x1ec   : > { %2484 = vmatprep.subr.bf16.mxu0 %v5028_v62 }
 0x1ef   : > { %2485 = vmatpush1.bf16.msra.mxu0 %v5026_v63  ;;  %v2541_v63 = vrot.slane %v4356_v60, %v6721_v55 }
 0x1f0   : > { %2486 = vmatprep.subr.bf16.mxu0 %v5034_v2 }
 0x1f3   : > { %2487 = vmatpush1.bf16.msra.mxu0 %v5032_v10 }
 0x1f4   : > { %2488 = vmatprep.subr.bf16.mxu0 %v5040_v20 }
 0x1f7   : > { %2489 = vmatpush1.bf16.msra.mxu0 %v5038_v23 }
 0x1f8   : > { %2490 = vmatprep.subr.bf16.mxu0 %v5046_v27 }
 0x1fb   : > { %2491 = vmatpush1.bf16.msra.mxu0 %v5044_v34 }
 0x1fc   : > { %2492 = vmatprep.subr.bf16.mxu0 %v5052_v21 }
 0x1ff   : > { %2493 = vmatpush1.bf16.msra.mxu0 %v5050_v38 }
 0x200   : > { %2494 = vmatprep.subr.bf16.mxu0 %v5058_v0 }
 0x203   : > { %2495 = vmatpush1.bf16.msra.mxu0 %v5056_v30 }
 0x204   : > { %2496 = vmatprep.subr.bf16.mxu0 %v5064_v43 }
 0x207   : > { %2497 = vmatpush1.bf16.msra.mxu0 %v5062_v24 }
 0x208   : > { %2498 = vmatprep.subr.bf16.mxu0 %v5070_v14 }
 0x20b   : > { %2499 = vmatpush1.bf16.msra.mxu0 %v5068_v28 }
 0x20c   : > { %2500 = vmatprep.subr.bf16.mxu0 %v5076_v44 }
 0x20f   : > { %2501 = vmatpush1.bf16.msra.mxu0 %v5074_v45 }
 0x210   : > { %2502 = vmatprep.subr.bf16.mxu0 %v5082_v46 }
 0x213   : > { %2503 = vmatpush1.bf16.msra.mxu0 %v5080_v6 }
 0x216   : > { %2505 = vmatmul.mubr.bf16.vlgmr.msra.gmra.mrb[0].mxu0 %v398_v35  ;;  %v5127_v35 = vld [vmem:[%s7402_s2 + $0xae4] ss:$8 sps:$4 sm:$0xff]  }
 0x217   : > { %3365 = vmatprep.subr.bf16.mxu1 %v5127_v35  ;;  %v5134_v35 = vld [vmem:[%s7402_s2 + $0xb10] ss:$8 sps:$4 sm:$0xff]  }
 0x218   : > { %3366 = vmatpush1.bf16.msra.mxu1 %v5125_v53  ;;  %v5139_v53 = vld [vmem:[%s7402_s2 + $0xb24] ss:$8 sps:$4 sm:$0xff]  }
 0x219   : > { %3367 = vmatprep.subr.bf16.mxu1 %v5130_v50 }
 0x21c   : > { %3368 = vmatpush1.bf16.msra.mxu1 %v5128_v61 }
 0x21d   : > { %3814 = vmatprep.subr.bf16.mxu1 %v5133_v51 }
 0x262   : > { %v2780_v40 = vpop.f32.mrb[4].mxu1 }
 0x263   : > { %v2782_v47 = vpop.f32.mrb[5].mxu1  ;;  %v2802_v31 = vmul.f32 %v2795_v56, %v2780_v40 }
 0x264   : > { %v2784_v49 = vpop.f32.mrb[6].mxu1  ;;  %v2803_v33 = vmul.f32 %v2799_v59, %v2782_v47 }
 0x265   : > { %v2786_v11 = vpop.f32.mrb[7].mxu1  ;;  %v2819_v10 = vadd.f32 %v2812_v22, %v2802_v31  ;;  %v2804_v23 = vmul.f32 %v2795_v56, %v2784_v49  ;;  %v5131_v49 = vld [vmem:[%s7402_s2 + $0xb00] ss:$8 sps:$4 sm:$0xff]   ;;  %v5140_v31 = vld [vmem:[%s7402_s2 + $0xb30] ss:$8 sps:$4 sm:$0xff]  }
 0x266   : > { %v2820_v21 = vadd.f32 %v2816_v36, %v2803_v33  ;;  %v2805_v0 = vmul.f32 %v2799_v59, %v2786_v11  ;;  %v5136_v11 = vld [vmem:[%s7402_s2 + $0xb14] ss:$8 sps:$4 sm:$0xff]   ;;  %v5143_v33 = vld [vmem:[%s7402_s2 + $0xb40] ss:$8 sps:$4 sm:$0xff]  }
 0x268   : > { %v2822_v46 = vadd.f32 %v2816_v36, %v2805_v0 }
 0x2e9   : > { %v2506_v8 = vpop.f32.mrb[0].mxu0 }
 0x2ea   : > { %v4496_v41 = vadd.f32 %v2506_v8, %v6622_v1  ;;  %v2508_v5 = vpop.f32.mrb[1].mxu0 }
 0x2eb   : > { %v4497_v62 = vadd.f32 %v2508_v5, %v6627_v15  ;;  %v2510_v2 = vpop.f32.mrb[2].mxu0  ;;  %v2821_v15 = vadd.f32 %v2812_v22, %v2804_v23  ;;  %v5145_v22 = vld [vmem:[%s7402_s2 + $0xb44] ss:$8 sps:$4 sm:$0xff]   ;;  %v5146_v5 = vld [vmem:[%s7402_s2 + $0xb50] ss:$8 sps:$4 sm:$0xff]  }
 0x2ec   : > { %v2527_v20 = vmul.f32 %v4496_v41, %v2520_v7  ;;  %v4498_v27 = vadd.f32 %v2510_v2, %v6629_v18  ;;  %v2512_v34 = vpop.f32.mrb[3].mxu0  ;;  %v5149_v2 = vld [vmem:[%s7402_s2 + $0xb60] ss:$8 sps:$4 sm:$0xff]  }
 0x2ed   : > { %v2528_v38 = vmul.f32 %v4497_v62, %v2524_v32  ;;  %v4499_v30 = vadd.f32 %v2512_v34, %v6631_v9  ;;  %v5151_v62 = vld [vmem:[%s7402_s2 + $0xb64] ss:$8 sps:$4 sm:$0xff]  }
 0x2ee   : > { %v2544_v1 = vadd.f32 %v2537_v12, %v2527_v20  ;;  %v2529_v43 = vmul.f32 %v4498_v27, %v2520_v7  ;;  %v5154_v20 = vld [vmem:[%s7402_s2 + $0xb74] ss:$8 sps:$4 sm:$0xff]  }
 0x2ef   : > { %v2545_v24 = vadd.f32 %v2541_v63, %v2528_v38  ;;  %v2530_v14 = vmul.f32 %v4499_v30, %v2524_v32  ;;  %v5148_v32 = vld [vmem:[%s7402_s2 + $0xb54] ss:$8 sps:$4 sm:$0xff]   ;;  %v5157_v38 = vld [vmem:[%s7402_s2 + $0xb84] ss:$8 sps:$4 sm:$0xff]   ;;  %v5155_v30 = vld [vmem:[%s7402_s2 + $0xb80] ss:$8 sps:$4 sm:$0xff]  }
 0x2f0   : > { %v6744_v28 = vadd.f32 %v2819_v10, %v2544_v1  ;;  %v2546_v44 = vadd.f32 %v2537_v12, %v2529_v43  ;;  %v2987_v43 = vrot.slane %v6355_v25, 7 }
 0x2f1   : > { %v6746_v45 = vadd.f32 %v2820_v21, %v2545_v24  ;;  %v2547_v6 = vadd.f32 %v2541_v63, %v2530_v14  ;;  %v5152_v21 = vld [vmem:[%s7402_s2 + $0xb70] ss:$8 sps:$4 sm:$0xff]   ;;  %v2989_v24 = vrot.slane %v6358_v26, 7  ;;  %v5160_v14 = vld [vmem:[%s7402_s2 + $0xb94] ss:$8 sps:$4 sm:$0xff]  }
 0x2f2   : > { %v6748_v37 = vadd.f32 %v2821_v15, %v2546_v44  ;;  %2883 = vrot.lane.b32.xlu0 %v6744_v28, %s5243_s12  ;;  %v3139_v47 = vmax.f32 %v6744_v28, 0.0  ;;  %v2923_v51 = vrot.slane %v6744_v28, 1  ;;  %v2827_v56 = vrot.slane %v6744_v28, 7  ;;  %v5158_v44 = vld [vmem:[%s7402_s2 + $0xb90] ss:$8 sps:$4 sm:$0xff]  }
 0x2f3   : > { %v6752_v18 = vadd.f32 %v2822_v46, %v2547_v6  ;;  %v3140_v39 = vmax.f32 %v6746_v45, 0.0  ;;  %v2828_v36 = vrot.slane %v6746_v45, 7  ;;  %v2924_v34 = vrot.slane %v6746_v45, 1 }
 0x2f4   : > { %2885 = vrot.lane.b32.xlu1 %v6748_v37, %s5243_s12  ;;  %v3141_v9 = vmax.f32 %v6748_v37, 0.0  ;;  %v2925_v61 = vrot.slane %v6748_v37, 1  ;;  %v2829_v50 = vrot.slane %v6748_v37, 7  ;;  %v2993_v46 = vsel %vm263_vm1, %v2989_v24, %v2987_v43 }
 0x2f5   : > { %v3142_v40 = vmax.f32 %v6752_v18, 0.0  ;;  %v2830_v8 = vrot.slane %v6752_v18, 7  ;;  %v2926_v23 = vrot.slane %v6752_v18, 1  ;;  %v2988_v6 = vrot.slane %v6345_v13, 7 }
 0x2f6   : > { %2903 = vrot.lane.b32.xlu0 %v6744_v28, %s5244_s18  ;;  %v3143_v29 = vpack.c.bf16 %v3141_v9, %v3139_v47  ;;  %v6796_v58 = vsel %vm353_vm2, %v2923_v51, %v2925_v61  ;;  %v2833_v59 = vsel %vm263_vm1, %v2829_v50, %v2827_v56  ;;  %v6804_v60 = vsel %vm263_vm1, %v2827_v56, %v2829_v50  ;;  %v5161_v47 = vld [vmem:[%s7402_s2 + $0xba0] ss:$8 sps:$4 sm:$0xff]   ;;  %v5172_v50 = vld [vmem:[%s7402_s2 + $0xbd4] ss:$8 sps:$4 sm:$0xff]  }
 0x2f7   : > { %v3144_v48 = vpack.c.bf16 %v3142_v40, %v3140_v39  ;;  %v6816_v7 = vsel %vm5322_vm0, 0.0, %v2833_v59  ;;  %v2834_v41 = vsel %vm263_vm1, %v2830_v8, %v2828_v36  ;;  %v6836_v12 = vsel %vm263_vm1, %v2828_v36, %v2830_v8  ;;  %v5163_v39 = vld [vmem:[%s7402_s2 + $0xba4] ss:$8 sps:$4 sm:$0xff]   ;;  %v5173_v56 = vld [vmem:[%s7402_s2 + $0xbe0] ss:$8 sps:$4 sm:$0xff]  }
 0x2f8   : > { %2905 = vrot.lane.b32.xlu1 %v6748_v37, %s5244_s18  ;;  %v6848_v63 = vsel %vm5322_vm0, 0.0, %v2834_v41  ;;  %v2929_v10 = vsel %vm353_vm2, %v2925_v61, %v2923_v51  ;;  %v6880_v0 = vsel %vm353_vm2, %v2924_v34, %v2926_v23  ;;  %v2930_v1 = vsel %vm353_vm2, %v2926_v23, %v2924_v34  ;;  %v5170_v51 = vld [vmem:[%s7402_s2 + $0xbd0] ss:$8 sps:$4 sm:$0xff]  }
 0x2f9   : > { %3369 = vmatprep.mubr.bf16.mxu1 %v3144_v48  ;;  %v6867_v27 = vsel %vm5467_vm3, 0.0, %v2929_v10  ;;  %v6900_v15 = vsel %vm5467_vm3, 0.0, %v2930_v1  ;;  %v2990_v9 = vrot.slane %v6348_v42, 7  ;;  %v6918_v40 = vsel %vm5322_vm0, -inf, %v2993_v46  ;;  %v5176_v59 = vld [vmem:[%s7402_s2 + $0xbf0] ss:$8 sps:$4 sm:$0xff]  }
 0x2fa   : > { %2887 = vrot.lane.b32.xlu0 %v6746_v45, %s5243_s12  ;;  %3370 = vmatmul.mubr.bf16.vlgmr.msra.gmra.mrb[8].mxu1 %v3143_v29  ;;  %v6932_v29 = vsel %vm263_vm1, %v2987_v43, %v2989_v24  ;;  %v3085_v8 = vrot.slane %v6358_v26, 1  ;;  %v3084_v36 = vrot.slane %v6345_v13, 1 }
 0x2fb   : > { %3815 = vmatpush1.bf16.msra.mxu1 %v5131_v49  ;;  %v2994_v48 = vsel %vm263_vm1, %v2990_v9, %v2988_v6  ;;  %v5166_v49 = vld [vmem:[%s7402_s2 + $0xbb4] ss:$8 sps:$4 sm:$0xff]   ;;  %v6950_v61 = vsel %vm263_vm1, %v2988_v6, %v2990_v9 }
 0x2fc   : > { %2889 = vrot.lane.b32.xlu1 %v6752_v18, %s5243_s12  ;;  %3816 = vmatprep.subr.bf16.mxu1 %v5136_v11  ;;  %v6938_v11 = vsel %vm5322_vm0, -inf, %v2994_v48 }
 0x2fe   : > { %2907 = vrot.lane.b32.xlu0 %v6746_v45, %s5244_s18 }
 0x2ff   : > { %3817 = vmatpush1.bf16.msra.mxu1 %v5134_v35  ;;  %v5164_v35 = vld [vmem:[%s7402_s2 + $0xbb0] ss:$8 sps:$4 sm:$0xff]  }
 0x300   : > { %2909 = vrot.lane.b32.xlu1 %v6752_v18, %s5244_s18  ;;  %3818 = vmatprep.subr.bf16.mxu1 %v5139_v53  ;;  %v5169_v53 = vld [vmem:[%s7402_s2 + $0xbc4] ss:$8 sps:$4 sm:$0xff]  }
 0x302   : > { %2935 = vrot.lane.b32.xlu0 %v6796_v58, %s5243_s12 }
 0x303   : > { %3819 = vmatpush1.bf16.msra.mxu1 %v5137_v54  ;;  %v5175_v54 = vld [vmem:[%s7402_s2 + $0xbe4] ss:$8 sps:$4 sm:$0xff]  }
 0x304   : > { %2841 = vrot.lane.b32.xlu1 %v6804_v60, %s5243_s12  ;;  %3820 = vmatprep.subr.bf16.mxu1 %v5142_v57  ;;  %v5178_v57 = vld [vmem:[%s7402_s2 + $0xbf4] ss:$8 sps:$4 sm:$0xff]  }
 0x306   : > { %2839 = vrot.lane.b32.xlu0 %v6816_v7, %s5243_s12 }
 0x307   : > { %3821 = vmatpush1.bf16.msra.mxu1 %v5140_v31  ;;  %v5181_v31 = vld [vmem:[%s7402_s2 + $0xc04] ss:$8 sps:$4 sm:$0xff]  }
 0x308   : > { %2865 = vrot.lane.b32.xlu1 %v6804_v60, %s5244_s18  ;;  %3822 = vmatprep.subr.bf16.mxu1 %v5145_v22  ;;  %v3083_v22 = vrot.slane %v6355_v25, 1 }
 0x30a   : > { %2863 = vrot.lane.b32.xlu0 %v6816_v7, %s5244_s18  ;;  %v7010_v41 = vsel %vm353_vm2, %v3083_v22, %v3085_v8 }
 0x30b   : > { %3823 = vmatpush1.bf16.msra.mxu1 %v5143_v33  ;;  %v3089_v33 = vsel %vm353_vm2, %v3085_v8, %v3083_v22 }
 0x30c   : > { %2845 = vrot.lane.b32.xlu1 %v6836_v12, %s5243_s12  ;;  %3824 = vmatprep.subr.bf16.mxu1 %v5148_v32  ;;  %v3086_v32 = vrot.slane %v6348_v42, 1 }
 0x30e   : > { %2843 = vrot.lane.b32.xlu0 %v6848_v63, %s5243_s12 }
 0x30f   : > { %3825 = vmatpush1.bf16.msra.mxu1 %v5146_v5 }
 0x310   : > { %2869 = vrot.lane.b32.xlu1 %v6836_v12, %s5244_s18  ;;  %3826 = vmatprep.subr.bf16.mxu1 %v5151_v62 }
 0x312   : > { %2867 = vrot.lane.b32.xlu0 %v6848_v63, %s5244_s18 }
 0x313   : > { %3827 = vmatpush1.bf16.msra.mxu1 %v5149_v2 }
 0x314   : > { %2937 = vrot.lane.b32.xlu1 %v6867_v27, %s5243_s12  ;;  %3828 = vmatprep.subr.bf16.mxu1 %v5154_v20 }
 0x316   : > { %2939 = vrot.lane.b32.xlu0 %v6880_v0, %s5243_s12 }
 0x317   : > { %3829 = vmatpush1.bf16.msra.mxu1 %v5152_v21 }
 0x318   : > { %2961 = vrot.lane.b32.xlu1 %v6867_v27, %s5244_s18  ;;  %3830 = vmatprep.subr.bf16.mxu1 %v5157_v38 }
 0x31a   : > { %2959 = vrot.lane.b32.xlu0 %v6796_v58, %s5244_s18 }
 0x31b   : > { %3831 = vmatpush1.bf16.msra.mxu1 %v5155_v30 }
 0x31c   : > { %2941 = vrot.lane.b32.xlu1 %v6900_v15, %s5243_s12  ;;  %3832 = vmatprep.subr.bf16.mxu1 %v5160_v14 }
 0x31e   : > { %2963 = vrot.lane.b32.xlu0 %v6880_v0, %s5244_s18 }
 0x31f   : > { %3833 = vmatpush1.bf16.msra.mxu1 %v5158_v44 }
 0x320   : > { %2965 = vrot.lane.b32.xlu1 %v6900_v15, %s5244_s18  ;;  %3834 = vmatprep.subr.bf16.mxu1 %v5163_v39 }
 0x322   : > { %2999 = vrot.lane.b32.xlu0 %v6918_v40, %s5243_s12 }
 0x323   : > { %3835 = vmatpush1.bf16.msra.mxu1 %v5161_v47 }
 0x324   : > { %3001 = vrot.lane.b32.xlu1 %v6932_v29, %s5243_s12  ;;  %3836 = vmatprep.subr.bf16.mxu1 %v5166_v49 }
 0x326   : > { %3003 = vrot.lane.b32.xlu0 %v6938_v11, %s5243_s12 }
 0x327   : > { %3837 = vmatpush1.bf16.msra.mxu1 %v5164_v35 }
 0x328   : > { %3005 = vrot.lane.b32.xlu1 %v6950_v61, %s5243_s12  ;;  %3838 = vmatprep.subr.bf16.mxu1 %v5169_v53 }
 0x32a   : > { %3023 = vrot.lane.b32.xlu0 %v6918_v40, %s5244_s18 }
 0x32b   : > { %3839 = vmatpush1.bf16.msra.mxu1 %v5167_v17 }
 0x32c   : > { %3025 = vrot.lane.b32.xlu1 %v6932_v29, %s5244_s18  ;;  %3840 = vmatprep.subr.bf16.mxu1 %v5172_v50 }
 0x32e   : > { %3027 = vrot.lane.b32.xlu0 %v6938_v11, %s5244_s18 }
 0x32f   : > { %3841 = vmatpush1.bf16.msra.mxu1 %v5170_v51 }
 0x330   : > { %3029 = vrot.lane.b32.xlu1 %v6950_v61, %s5244_s18  ;;  %3842 = vmatprep.subr.bf16.mxu1 %v5175_v54 }
 0x332   : > { %3043 = vrot.lane.b32.xlu0 %v6355_v25, %s5243_s12 }
 0x333   : > { %3843 = vmatpush1.bf16.msra.mxu1 %v5173_v56 }
 0x334   : > { %3045 = vrot.lane.b32.xlu1 %v6358_v26, %s5243_s12  ;;  %3844 = vmatprep.subr.bf16.mxu1 %v5178_v57 }
 0x336   : > { %3047 = vrot.lane.b32.xlu0 %v6345_v13, %s5243_s12 }
 0x337   : > { %3845 = vmatpush1.bf16.msra.mxu1 %v5176_v59 }
 0x338   : > { %3049 = vrot.lane.b32.xlu1 %v6348_v42, %s5243_s12  ;;  %3857 = vmatprep.subr.bf16.mxu1 %v5181_v31 }
 0x33a   : > { %3063 = vrot.lane.b32.xlu0 %v6355_v25, %s5244_s18  ;;  %v7016_v25 = vsel %vm5467_vm3, -inf, %v3089_v33 }
 0x33c   : > { %3065 = vrot.lane.b32.xlu1 %v6358_v26, %s5244_s18  ;;  %v3090_v26 = vsel %vm353_vm2, %v3086_v32, %v3084_v36 }
 0x33e   : > { %3067 = vrot.lane.b32.xlu0 %v6345_v13, %s5244_s18  ;;  %v7024_v13 = vsel %vm353_vm2, %v3084_v36, %v3086_v32 }
 0x340   : > { %3069 = vrot.lane.b32.xlu1 %v6348_v42, %s5244_s18  ;;  %v7030_v42 = vsel %vm5467_vm3, -inf, %v3090_v26 }
 0x342   : > { %3095 = vrot.lane.b32.xlu0 %v7010_v41, %s5243_s12 }
 0x344   : > { %3097 = vrot.lane.b32.xlu1 %v7016_v25, %s5243_s12 }
 0x346   : > { %3099 = vrot.lane.b32.xlu0 %v7024_v13, %s5243_s12 }
 0x348   : > { %3101 = vrot.lane.b32.xlu1 %v7030_v42, %s5243_s12 }
 0x34a   : > { %3119 = vrot.lane.b32.xlu0 %v7010_v41, %s5244_s18 }
 0x34c   : > { %3121 = vrot.lane.b32.xlu1 %v7016_v25, %s5244_s18 }
 0x34e   : > { %3123 = vrot.lane.b32.xlu0 %v7024_v13, %s5244_s18 }
 0x350   : > { %3125 = vrot.lane.b32.xlu1 %v7030_v42, %s5244_s18  ;;  %s229_s18 = scalar_lea.vmem %s7404_s4, %s5297_s28 }
 0x364   : > { %v2884_v3 = vpop.permute.xlu0 %2883 }
 0x366   : > { %v2886_v4 = vpop.permute.xlu1 %2885 }
 0x368   : > { %v2904_v5 = vpop.permute.xlu0 %2903 }
 0x36a   : > { %v7044_v62 = vpop.permute.xlu1 %2905 }
 0x36c   : > { %v2888_v2 = vpop.permute.xlu0 %2887 }
 0x36d   : > { %v2891_v33 = vsel %vm243_vm5, %v2884_v3, %v2888_v2 }
 0x36e   : > { %v2890_v10 = vpop.permute.xlu1 %2889 }
 0x370   : > { %v2908_v20 = vpop.permute.xlu0 %2907 }
 0x371   : > { %v2913_v36 = vsel %vm300_vm7, %v2908_v20, %v2904_v5 }
 0x372   : > { %v2910_v23 = vpop.permute.xlu1 %2909 }
 0x374   : > { %v2936_v34 = vpop.permute.xlu0 %2935 }
 0x376   : > { %v2842_v21 = vpop.permute.xlu1 %2841 }
 0x378   : > { %v2840_v38 = vpop.permute.xlu0 %2839 }
 0x37a   : > { %v2866_v30 = vpop.permute.xlu1 %2865 }
 0x37c   : > { %v2864_v1 = vpop.permute.xlu0 %2863 }
 0x37e   : > { %v2846_v43 = vpop.permute.xlu1 %2845 }
 0x37f   : > { %v2848_v24 = vsel %vm243_vm5, %v2842_v21, %v2846_v43  ;;  %v2850_v14 = vsel %vm243_vm5, %v2846_v43, %v2842_v21  ;;  %v2892_v21 = vsel %vm243_vm5, %v2886_v4, %v2890_v10 }
 0x380   : > { %v2853_v44 = vsel %vm243_vm5, 0.0, %v2850_v14  ;;  %v2858_v46 = vadd.f32 %v2848_v24, %v6752_v18  ;;  %v2844_v6 = vpop.permute.xlu0 %2843 }
 0x381   : > { %v2857_v9 = vadd.f32 %v2853_v44, %v6748_v37  ;;  %v2847_v39 = vsel %vm243_vm5, %v2840_v38, %v2844_v6  ;;  %v2849_v47 = vsel %vm243_vm5, %v2844_v6, %v2840_v38 }
 0x382   : > { %v2862_v48 = vadd.f32 %v2858_v46, %v6836_v12  ;;  %v2851_v49 = vsel %vm243_vm5, 0.0, %v2849_v47  ;;  %v2856_v35 = vadd.f32 %v2847_v39, %v6746_v45  ;;  %v2870_v53 = vpop.permute.xlu1 %2869  ;;  %v2893_v45 = vsel %vm243_vm5, %v2888_v2, %v2884_v3 }
 0x383   : > { %v2855_v17 = vadd.f32 %v2851_v49, %v6744_v28  ;;  %v2861_v18 = vadd.f32 %v2857_v9, %v6804_v60  ;;  %v2874_v37 = vsel %vm300_vm7, %v2870_v53, %v2866_v30  ;;  %v2872_v51 = vsel %vm300_vm7, %v2866_v30, %v2870_v53 }
 0x384   : > { %v2860_v50 = vadd.f32 %v2856_v35, %v6848_v63  ;;  %v2878_v12 = vsel %vm246_vm4, 0.0, %v2874_v37  ;;  %v2868_v54 = vpop.permute.xlu0 %2867  ;;  %v2894_v60 = vsel %vm243_vm5, %v2890_v10, %v2886_v4  ;;  %v2911_v3 = vsel %vm300_vm7, %v2904_v5, %v2908_v20 }
 0x385   : > { %v2859_v56 = vadd.f32 %v2855_v17, %v6816_v7  ;;  %v2871_v28 = vsel %vm300_vm7, %v2864_v1, %v2868_v54  ;;  %v2882_v57 = vadd.f32 %v2878_v12, %v2862_v48  ;;  %v2873_v63 = vsel %vm300_vm7, %v2868_v54, %v2864_v1 }
 0x386   : > { %v2938_v59 = vpop.permute.xlu1 %2937  ;;  %v2881_v31 = vadd.f32 %v2872_v51, %v2861_v18  ;;  %v2876_v22 = vsel %vm246_vm4, 0.0, %v2873_v63  ;;  %v2895_v7 = vsel %vm243_vm5, 0.0, %v2893_v45  ;;  %v2897_v38 = vsel %vm243_vm5, 0.0, %v2894_v60 }
 0x387   : > { %v2879_v8 = vadd.f32 %v2871_v28, %v2859_v56  ;;  %v2880_v32 = vadd.f32 %v2876_v22, %v2860_v50  ;;  %v2914_v2 = vsel %vm300_vm7, %v2910_v23, %v7044_v62  ;;  %v2902_v43 = vadd.f32 %v2892_v21, %v2882_v57  ;;  %v5228_v21 = vld [vmem:[%s5304_s5 + $0x8] sm:$0xff] }
 0x388   : > { %v2940_v26 = vpop.permute.xlu0 %2939  ;;  %v2916_v4 = vsel %vm246_vm4, 0.0, %v2913_v36  ;;  %v2901_v10 = vadd.f32 %v2897_v38, %v2881_v31  ;;  %v2918_v5 = vsel %vm246_vm4, 0.0, %v2914_v2  ;;  %v2912_v47 = vsel %vm300_vm7, %v7044_v62, %v2910_v23  ;;  %v5230_v2 = vld [vmem:[%s5304_s5 + $0x18] sm:$0xff] }
 0x389   : > { %v2899_v30 = vadd.f32 %v2895_v7, %v2879_v8  ;;  %v2945_v1 = vsel %vm243_vm5, %v2940_v26, %v2936_v34  ;;  %v2900_v24 = vadd.f32 %v2891_v33, %v2880_v32  ;;  %v2943_v20 = vsel %vm243_vm5, %v2936_v34, %v2940_v26 }
 0x38a   : > { %v2962_v14 = vpop.permute.xlu1 %2961  ;;  %v2947_v6 = vsel %vm243_vm5, 0.0, %v2945_v1  ;;  %v2922_v49 = vadd.f32 %v2918_v5, %v2902_v43  ;;  %v2921_v53 = vadd.f32 %v2912_v47, %v2901_v10  ;;  %v5229_v1 = vld [vmem:[%s5304_s5 + $0x10] sm:$0xff] }
 0x38b   : > { %v2919_v44 = vadd.f32 %v2911_v3, %v2899_v30  ;;  %v2920_v46 = vadd.f32 %v2916_v4, %v2900_v24 }
 0x38c   : > { %v2960_v9 = vpop.permute.xlu0 %2959 }
 0x38d   : > { %v2951_v39 = vadd.f32 %v2947_v6, %v2919_v44  ;;  %v2952_v48 = vadd.f32 %v2943_v20, %v2920_v46  ;;  %v5179_v20 = vld [vmem:[%s7402_s2 + $0xc00] ss:$8 sps:$4 sm:$0xff]  }
 0x38e   : > { %v2942_v35 = vpop.permute.xlu1 %2941 }
 0x38f   : > { %v2944_v17 = vsel %vm243_vm5, %v2938_v59, %v2942_v35  ;;  %v2946_v18 = vsel %vm243_vm5, %v2942_v35, %v2938_v59  ;;  %v2955_v37 = vadd.f32 %v2951_v39, %v6796_v58  ;;  %v2956_v12 = vadd.f32 %v2952_v48, %v6880_v0  ;;  %v5184_v39 = vld [vmem:[%s7402_s2 + $0xc14] ss:$8 sps:$4 sm:$0xff]   ;;  %v5187_v35 = vld [vmem:[%s7402_s2 + $0xc24] ss:$8 sps:$4 sm:$0xff]  }
 0x390   : > { %v2949_v34 = vsel %vm243_vm5, 0.0, %v2946_v18  ;;  %v2954_v50 = vadd.f32 %v2944_v17, %v2922_v49  ;;  %v2964_v51 = vpop.permute.xlu0 %2963  ;;  %v5182_v49 = vld [vmem:[%s7402_s2 + $0xc10] ss:$8 sps:$4 sm:$0xff]   ;;  %v5185_v18 = vld [vmem:[%s7402_s2 + $0xc20] ss:$8 sps:$4 sm:$0xff]  }
 0x391   : > { %v2953_v62 = vadd.f32 %v2949_v34, %v2921_v53  ;;  %v2967_v23 = vsel %vm300_vm7, %v2960_v9, %v2964_v51  ;;  %v2969_v54 = vsel %vm300_vm7, %v2964_v51, %v2960_v9  ;;  %v5188_v51 = vld [vmem:[%s7402_s2 + $0xc30] ss:$8 sps:$4 sm:$0xff]  }
 0x392   : > { %v2958_v45 = vadd.f32 %v2954_v50, %v6900_v15  ;;  %v2972_v58 = vsel %vm246_vm4, 0.0, %v2969_v54  ;;  %v2975_v56 = vadd.f32 %v2967_v23, %v2955_v37  ;;  %v2966_v28 = vpop.permute.xlu1 %2965  ;;  %v5190_v37 = vld [vmem:[%s7402_s2 + $0xc34] ss:$8 sps:$4 sm:$0xff]   ;;  %v5191_v54 = vld [vmem:[%s7402_s2 + $0xc40] ss:$8 sps:$4 sm:$0xff]  }
 0x393   : > { %v2976_v60 = vadd.f32 %v2972_v58, %v2956_v12  ;;  %v2957_v57 = vadd.f32 %v2953_v62, %v6867_v27  ;;  %v2968_v0 = vsel %vm300_vm7, %v2962_v14, %v2966_v28  ;;  %v2970_v63 = vsel %vm300_vm7, %v2966_v28, %v2962_v14  ;;  %v5227_v27 = vld [vmem:[%s5304_s5] sm:$0xff] }
 0x394   : > { %v2979_v59 = vmul.f32 0.11111111, %v2975_v56  ;;  %v2974_v15 = vsel %vm246_vm4, 0.0, %v2970_v63  ;;  %v7132_v31 = vpop.permute.xlu0 %2999  ;;  %v5193_v12 = vld [vmem:[%s7402_s2 + $0xc44] ss:$8 sps:$4 sm:$0xff]  }
 0x395   : > { %v2980_v22 = vmul.f32 0.11111111, %v2976_v60  ;;  %v2977_v8 = vadd.f32 %v2968_v0, %v2957_v57  ;;  %v2978_v33 = vadd.f32 %v2974_v15, %v2958_v45  ;;  %v5196_v45 = vld [vmem:[%s7402_s2 + $0xc54] ss:$8 sps:$4 sm:$0xff]   ;;  %v5194_v60 = vld [vmem:[%s7402_s2 + $0xc50] ss:$8 sps:$4 sm:$0xff]  }
 0x396   : > { %v7134_v7 = vpop.permute.xlu1 %3001  ;;  %v2983_v36 = vadd.f32 %v5227_v27, %v2979_v59  ;;  %v5199_v57 = vld [vmem:[%s7402_s2 + $0xc64] ss:$8 sps:$4 sm:$0xff]   ;;  %v5197_v15 = vld [vmem:[%s7402_s2 + $0xc60] ss:$8 sps:$4 sm:$0xff]  }
 0x397   : > { %v2981_v32 = vmul.f32 0.11111111, %v2977_v8  ;;  %v2982_v26 = vmul.f32 0.11111111, %v2978_v33  ;;  %v2984_v38 = vadd.f32 %v5228_v21, %v2980_v22  ;;  %v5202_v22 = vld [vmem:[%s7402_s2 + $0xc74] ss:$8 sps:$4 sm:$0xff]  }
 0x398   : > { %v3004_v30 = vpop.permute.xlu0 %3003  ;;  %v3418_v14 = vmax.f32 %v2983_v36, 0.0  ;;  %v5231_v33 = vld [vmem:[%s6322_s24] sm:$0xff]  ;;  %v5200_v21 = vld [vmem:[%s7402_s2 + $0xc70] ss:$8 sps:$4 sm:$0xff]  }
 0x399   : > { %v2985_v3 = vadd.f32 %v5229_v1, %v2981_v32  ;;  %v2986_v43 = vadd.f32 %v5230_v2, %v2982_v26  ;;  %v3419_v44 = vmax.f32 %v2984_v38, 0.0  ;;  %v3009_v56 = vsel %vm243_vm5, %v3004_v30, %v7132_v31  ;;  %v5232_v38 = vld [vmem:[%s6322_s24 + $0x8] sm:$0xff] }
 0x39a   : > { %v3006_v24 = vpop.permute.xlu1 %3005  ;;  %v3011_v0 = vsel %vm243_vm5, -inf, %v3009_v56  ;;  %v3007_v8 = vsel %vm243_vm5, %v7132_v31, %v3004_v30  ;;  %v5233_v31 = vld [vmem:[%s6322_s24 + $0x10] sm:$0xff] }
 0x39b   : > { %v3420_v4 = vmax.f32 %v2985_v3, 0.0  ;;  %v3421_v46 = vmax.f32 %v2986_v43, 0.0  ;;  %v3010_v63 = vsel %vm243_vm5, %v3006_v24, %v7134_v7  ;;  %v3015_v27 = vmax.f32 %v5231_v33, %v3011_v0  ;;  %v5205_v3 = vld [vmem:[%s7402_s2 + $0xc84] ss:$8 sps:$4 sm:$0xff]  }
 0x39c   : > { %v7140_v10 = vpop.permute.xlu0 %3023  ;;  %v3013_v36 = vsel %vm243_vm5, -inf, %v3010_v63  ;;  %v3008_v26 = vsel %vm243_vm5, %v7134_v7, %v3006_v24  ;;  %v3016_v1 = vmax.f32 %v5232_v38, %v3007_v8 }
 0x39d   : > { %v3422_v6 = vpack.c.bf16 %v3420_v4, %v3418_v14  ;;  %v3423_v5 = vpack.c.bf16 %v3421_v46, %v3419_v44  ;;  %v3017_v30 = vmax.f32 %v5233_v31, %v3013_v36  ;;  %v3019_v2 = vmax.f32 %v3015_v27, %v6918_v40  ;;  %v5234_v14 = vld [vmem:[%s6322_s24 + $0x18] sm:$0xff]  ;;  %v5203_v40 = vld [vmem:[%s7402_s2 + $0xc80] ss:$8 sps:$4 sm:$0xff]  }
 0x39e   : > { %v7142_v9 = vpop.permute.xlu1 %3025  ;;  %v3018_v4 = vmax.f32 %v5234_v14, %v3008_v26 }
 0x39f   : > { %3846 = vmatprep.mubr.bf16.mxu1 %v3423_v5  ;;  %v3021_v5 = vmax.f32 %v3017_v30, %v6932_v29  ;;  %v4424_v30 = vld [vmem:[%s7403_s3 + $0x5] ss:$8 sm:$0x3] }
 0x3a0   : > { %v3028_v47 = vpop.permute.xlu0 %3027  ;;  %3847 = vmatmul.mubr.bf16.vlgmr.msra.gmra.mrb[12].mxu1 %v3422_v6  ;;  %v3020_v6 = vmax.f32 %v3016_v1, %v6938_v11  ;;  %v3022_v29 = vmax.f32 %v3018_v4, %v6950_v61 }
 0x3a1   : > { %3858 = vmatpush1.bf16.msra.mxu1 %v5179_v20  ;;  %v3031_v7 = vsel %vm300_vm7, %v7140_v10, %v3028_v47  ;;  %v3033_v24 = vsel %vm300_vm7, %v3028_v47, %v7140_v10  ;;  %v5208_v20 = vld [vmem:[%s7402_s2 + $0xc94] ss:$8 sps:$4 sm:$0xff]  }
 0x3a2   : > { %v7150_v48 = vpop.permute.xlu1 %3029  ;;  %3859 = vmatprep.subr.bf16.mxu1 %v5184_v39  ;;  %v3036_v39 = vsel %vm246_vm4, -inf, %v3033_v24  ;;  %v3039_v47 = vmax.f32 %v3019_v2, %v3031_v7 }
 0x3a3   : > { %v3034_v10 = vsel %vm300_vm7, %v7150_v48, %v7142_v9  ;;  %v3032_v11 = vsel %vm300_vm7, %v7142_v9, %v7150_v48  ;;  %v3040_v9 = vmax.f32 %v3020_v6, %v3036_v39  ;;  %v3407_v39 = vrot.slane %v4424_v30, %v6721_v55 }
 0x3a4   : > { %v7158_v53 = vpop.permute.xlu0 %3043  ;;  %v3041_v48 = vmax.f32 %v3021_v5, %v3032_v11 }
 0x3a5   : > { %3860 = vmatpush1.bf16.msra.mxu1 %v5182_v49 }
 0x3a6   : > { %v7160_v17 = vpop.permute.xlu1 %3045  ;;  %3861 = vmatprep.subr.bf16.mxu1 %v5187_v35 }
 0x3a8   : > { %v7168_v34 = vpop.permute.xlu0 %3047 }
 0x3a9   : > { %3862 = vmatpush1.bf16.msra.mxu1 %v5185_v18  ;;  %v3053_v44 = vsel %vm243_vm5, %v7168_v34, %v7158_v53  ;;  %v3038_v18 = vsel %vm246_vm4, -inf, %v3034_v10 }
 0x3aa   : > { %v7170_v50 = vpop.permute.xlu1 %3049  ;;  %3863 = vmatprep.subr.bf16.mxu1 %v5190_v37  ;;  %v3055_v49 = vsel %vm243_vm5, -inf, %v3053_v44  ;;  %v3042_v0 = vmax.f32 %v3022_v29, %v3038_v18 }
 0x3ab   : > { %v3054_v35 = vsel %vm243_vm5, %v7170_v50, %v7160_v17 }
 0x3ac   : > { %v7178_v62 = vpop.permute.xlu0 %3063  ;;  %v3057_v56 = vsel %vm243_vm5, -inf, %v3054_v35  ;;  %v5215_v35 = vld [vmem:[%s7402_s2 + $0xcc0] ss:$8 sps:$4 sm:$0xff]  }
 0x3ad   : > { %3864 = vmatpush1.bf16.msra.mxu1 %v5188_v51  ;;  %v5206_v51 = vld [vmem:[%s7402_s2 + $0xc90] ss:$8 sps:$4 sm:$0xff]   ;;  %v3061_v33 = vmax.f32 %v3041_v48, %v3057_v56 }
 0x3ae   : > { %v7180_v23 = vpop.permute.xlu1 %3065  ;;  %3865 = vmatprep.subr.bf16.mxu1 %v5193_v12  ;;  %v5211_v12 = vld [vmem:[%s7402_s2 + $0xca4] ss:$8 sps:$4 sm:$0xff]  }
 0x3b0   : > { %v7188_v58 = vpop.permute.xlu0 %3067 }
 0x3b1   : > { %3866 = vmatpush1.bf16.msra.mxu1 %v5191_v54  ;;  %v3073_v61 = vsel %vm300_vm7, %v7188_v58, %v7178_v62  ;;  %v3051_v54 = vsel %vm243_vm5, %v7158_v53, %v7168_v34  ;;  %v3071_v63 = vsel %vm300_vm7, %v7178_v62, %v7188_v58  ;;  %v5209_v58 = vld [vmem:[%s7402_s2 + $0xca0] ss:$8 sps:$4 sm:$0xff]  }
 0x3b2   : > { %v7193_v28 = vpop.permute.xlu1 %3069  ;;  %3867 = vmatprep.subr.bf16.mxu1 %v5196_v45  ;;  %v3059_v45 = vmax.f32 %v3039_v47, %v3055_v49  ;;  %v3060_v8 = vmax.f32 %v3040_v9, %v3051_v54 }
 0x3b3   : > { %v3074_v53 = vsel %vm300_vm7, %v7193_v28, %v7180_v23  ;;  %v3072_v62 = vsel %vm300_vm7, %v7180_v23, %v7193_v28 }
 0x3b4   : > { %v7206_v59 = vpop.permute.xlu0 %3095  ;;  %v3079_v23 = vmax.f32 %v3059_v45, %v3071_v63  ;;  %v3078_v28 = vsel %vm246_vm4, -inf, %v3074_v53  ;;  %v3081_v31 = vmax.f32 %v3061_v33, %v3072_v62  ;;  %v5218_v53 = vld [vmem:[%s7402_s2 + $0xcd0] ss:$8 sps:$4 sm:$0xff]   ;;  %v5221_v33 = vld [vmem:[%s7402_s2 + $0xce0] ss:$8 sps:$4 sm:$0xff]  }
 0x3b5   : > { %3868 = vmatpush1.bf16.msra.mxu1 %v5194_v60 }
 0x3b6   : > { %3869 = vmatprep.subr.bf16.mxu1 %v5199_v57  ;;  %v7220_v32 = vpop.permute.xlu1 %3097 }
 0x3b8   : > { %v3100_v43 = vpop.permute.xlu0 %3099 }
 0x3b9   : > { %3870 = vmatpush1.bf16.msra.mxu1 %v5197_v15  ;;  %v3105_v60 = vsel %vm243_vm5, %v3100_v43, %v7206_v59  ;;  %v3052_v15 = vsel %vm243_vm5, %v7160_v17, %v7170_v50  ;;  %v5214_v17 = vld [vmem:[%s7402_s2 + $0xcb4] ss:$8 sps:$4 sm:$0xff]   ;;  %v4423_v50 = vld [vmem:[%s7403_s3 + $0x4] ss:$8 sm:$0x3]  ;;  %v3103_v36 = vsel %vm243_vm5, %v7206_v59, %v3100_v43 }
 0x3ba   : > { %3871 = vmatprep.subr.bf16.mxu1 %v5202_v22  ;;  %v3102_v46 = vpop.permute.xlu1 %3101  ;;  %v3076_v22 = vsel %vm246_vm4, -inf, %v3073_v61  ;;  %v3107_v27 = vsel %vm243_vm5, -inf, %v3105_v60  ;;  %v3062_v38 = vmax.f32 %v3042_v0, %v3052_v15  ;;  %v5212_v59 = vld [vmem:[%s7402_s2 + $0xcb0] ss:$8 sps:$4 sm:$0xff]   ;;  %v3386_v43 = vrot.slane %v4423_v50, %v6715_v52 }
 0x3bb   : > { %v3106_v34 = vsel %vm243_vm5, %v3102_v46, %v7220_v32  ;;  %v3080_v1 = vmax.f32 %v3060_v8, %v3076_v22  ;;  %v3104_v2 = vsel %vm243_vm5, %v7220_v32, %v3102_v46  ;;  %v3390_v4 = vrot.slane %v4423_v50, %v6721_v55  ;;  %v5217_v32 = vld [vmem:[%s7402_s2 + $0xcc4] ss:$8 sps:$4 sm:$0xff]   ;;  %v5226_v50 = vld [vmem:[%s7402_s2 + $0xcf4] ss:$8 sps:$4 sm:$0xff]  }
 0x3bc   : > { %v3120_v37 = vpop.permute.xlu0 %3119  ;;  %v3109_v26 = vsel %vm243_vm5, -inf, %v3106_v34  ;;  %v3082_v7 = vmax.f32 %v3062_v38, %v3078_v28  ;;  %v3403_v46 = vrot.slane %v4424_v30, %v6715_v52  ;;  %v5223_v22 = vld [vmem:[%s7402_s2 + $0xce4] ss:$8 sps:$4 sm:$0xff]  }
 0x3bd   : > { %3872 = vmatpush1.bf16.msra.mxu1 %v5200_v21  ;;  %v3112_v24 = vmax.f32 %v3080_v1, %v3103_v36  ;;  %v3113_v44 = vmax.f32 %v3081_v31, %v3109_v26  ;;  %v5224_v36 = vld [vmem:[%s7402_s2 + $0xcf0] ss:$8 sps:$4 sm:$0xff]   ;;  %v4489_v26 = vld [vmem:[%s7403_s3 + $0x6] ss:$8 sm:$0x3] }
 0x3be   : > { %3873 = vmatprep.subr.bf16.mxu1 %v5205_v3  ;;  %v3122_v57 = vpop.permute.xlu1 %3121  ;;  %v3111_v3 = vmax.f32 %v3079_v23, %v3107_v27  ;;  %v3114_v6 = vmax.f32 %v3082_v7, %v3104_v2  ;;  %v3906_v38 = vrot.slane %v4489_v26, %v6715_v52  ;;  %v3910_v1 = vrot.slane %v4489_v26, %v6721_v55 }
 0x3bf   : > { %v3116_v18 = vmax.f32 %v3112_v24, %v7024_v13 }
 0x3c0   : > { %v3124_v21 = vpop.permute.xlu0 %3123  ;;  %v3115_v47 = vmax.f32 %v3111_v3, %v7010_v41  ;;  %v5220_v41 = vld [vmem:[%s7402_s2 + $0xcd4] ss:$8 sps:$4 sm:$0xff]   ;;  %v3118_v13 = vmax.f32 %v3114_v6, %v7030_v42 }
 0x3c1   : > { %3874 = vmatpush1.bf16.msra.mxu1 %v5203_v40  ;;  %v3129_v40 = vsel %vm300_vm7, %v3124_v21, %v3120_v37  ;;  %v3127_v5 = vsel %vm300_vm7, %v3120_v37, %v3124_v21  ;;  %v3117_v37 = vmax.f32 %v3113_v44, %v7016_v25  ;;  %v4490_v21 = vld [vmem:[%s7403_s3 + $0x7] ss:$8 sm:$0x3] }
 0x3c2   : > { %3875 = vmatprep.subr.bf16.mxu1 %v5208_v20  ;;  %v3126_v14 = vpop.permute.xlu1 %3125  ;;  %v3132_v11 = vsel %vm246_vm4, -inf, %v3129_v40  ;;  %v3135_v61 = vmax.f32 %v3115_v47, %v3127_v5  ;;  %v3923_v31 = vrot.slane %v4490_v21, %v6715_v52  ;;  %v3927_v3 = vrot.slane %v4490_v21, %v6721_v55 }
 0x3c3   : > { %v3130_v10 = vsel %vm300_vm7, %v3126_v14, %v3122_v57  ;;  %v3136_v25 = vmax.f32 %v3116_v18, %v3132_v11 }
 0x3c5   : > { %3876 = vmatpush1.bf16.msra.mxu1 %v5206_v51  ;;  %v3128_v51 = vsel %vm300_vm7, %v3122_v57, %v3126_v14 }
 0x3c6   : > { %3877 = vmatprep.subr.bf16.mxu1 %v5211_v12  ;;  %v3134_v12 = vsel %vm246_vm4, -inf, %v3130_v10  ;;  %v3137_v57 = vmax.f32 %v3117_v37, %v3128_v51 }
 0x3c7   : > { %v3138_v34 = vmax.f32 %v3118_v13, %v3134_v12 }
 0x3c9   : > { %3878 = vmatpush1.bf16.msra.mxu1 %v5209_v58 }
 0x3ca   : > { %3879 = vmatprep.subr.bf16.mxu1 %v5214_v17 }
 0x3cd   : > { %v3371_v20 = vpop.f32.mrb[8].mxu1  ;;  %3880 = vmatpush1.bf16.msra.mxu1 %v5212_v59 }
 0x3ce   : > { %v3393_v29 = vmul.f32 %v3386_v43, %v3371_v20  ;;  %v3373_v49 = vpop.f32.mrb[9].mxu1  ;;  %3881 = vmatprep.subr.bf16.mxu1 %v5217_v32 }
 0x3cf   : > { %v3394_v9 = vmul.f32 %v3390_v4, %v3373_v49  ;;  %v3375_v48 = vpop.f32.mrb[10].mxu1 }
 0x3d0   : > { %v3410_v54 = vadd.f32 %v3403_v46, %v3393_v29  ;;  %v3395_v45 = vmul.f32 %v3386_v43, %v3375_v48  ;;  %v3377_v56 = vpop.f32.mrb[11].mxu1 }
 0x3d1   : > { %v3411_v60 = vadd.f32 %v3407_v39, %v3394_v9  ;;  %v3396_v16 = vmul.f32 %v3390_v4, %v3377_v56  ;;  %3882 = vmatpush1.bf16.msra.mxu1 %v5215_v35 }
 0x3d2   : > { %v3414_v0 = vadd.f32 %v3410_v54, %v3135_v61  ;;  %v3412_v63 = vadd.f32 %v3403_v46, %v3395_v45  ;;  %3883 = vmatprep.subr.bf16.mxu1 %v5220_v41 }
 0x3d3   : > { %v3415_v15 = vadd.f32 %v3411_v60, %v3136_v25  ;;  %v3413_v19 = vadd.f32 %v3407_v39, %v3396_v16 }
 0x3d4   : > { %v3416_v42 = vadd.f32 %v3412_v63, %v3137_v57  ;;  %v3424_v58 = vmax.f32 %v3414_v0, 0.0 }
 0x3d5   : > { %v3417_v62 = vadd.f32 %v3413_v19, %v3138_v34  ;;  %3884 = vmatpush1.bf16.msra.mxu1 %v5218_v53  ;;  %v3425_v27 = vmax.f32 %v3415_v15, 0.0 }
 0x3d6   : > { %v3426_v8 = vmax.f32 %v3416_v42, 0.0  ;;  %3885 = vmatprep.subr.bf16.mxu1 %v5223_v22 }
 0x3d7   : > { %v3427_v17 = vmax.f32 %v3417_v62, 0.0 }
 0x3d8   : > { %v3428_v23 = vpack.c.bf16 %v3426_v8, %v3424_v58 }
 0x3d9   : > { %v3429_v28 = vpack.c.bf16 %v3427_v17, %v3425_v27  ;;  %3886 = vmatpush1.bf16.msra.mxu1 %v5221_v33 }
 0x3da   : > { %3887 = vmatprep.subr.bf16.mxu1 %v5226_v50 }
 0x3db   : > { %3889 = vmatprep.mubr.bf16.mxu1 %v3429_v28 }
 0x3dd   : > { %3888 = vmatpush1.bf16.msra.mxu1 %v5224_v36 }
 0x3e0   : > { %3890 = vmatmul.mubr.bf16.vlgmr.msra.gmra.mrb[12].mxu1 %v3428_v23 }
 0x4b3   : > { %v3891_v30 = vpop.f32.mrb[12].mxu1 }
 0x4b4   : > { %v3913_v2 = vmul.f32 %v3906_v38, %v3891_v30  ;;  %v3893_v14 = vpop.f32.mrb[13].mxu1 }
 0x4b5   : > { %v3914_v59 = vmul.f32 %v3910_v1, %v3893_v14  ;;  %v3895_v43 = vpop.f32.mrb[14].mxu1 }
 0x4b6   : > { %v3930_v4 = vadd.f32 %v3923_v31, %v3913_v2  ;;  %v3915_v7 = vmul.f32 %v3906_v38, %v3895_v43  ;;  %v3897_v24 = vpop.f32.mrb[15].mxu1 }
 0x4b7   : > { %v3931_v44 = vadd.f32 %v3927_v3, %v3914_v59  ;;  %v3916_v40 = vmul.f32 %v3910_v1, %v3897_v24 }
 0x4b8   : > { %3934 = vst [vmem:[%s229_s18] sm:$0xff] %v3930_v4  ;;  %v3932_v32 = vadd.f32 %v3923_v31, %v3915_v7 }
 0x4b9   : > { %3935 = vst [vmem:[%s229_s18 + $0x8] sm:$0xff] %v3931_v44  ;;  %v3933_v52 = vadd.f32 %v3927_v3, %v3916_v40 }
 0x4ba   : > { %3936 = vst [vmem:[%s229_s18 + $0x10] sm:$0xff] %v3932_v32 }
 0x4bb   : > { %3937 = vst [vmem:[%s229_s18 + $0x18] sm:$0xff] %v3933_v52 }
 0x4bc PF: > { %s14_s15 = sadd.s32 1, %s5241_s15  }
 0x4bd   : > { %p11_p4 = scmp.ge.s32.totalorder %s14_s15, 4  }
 0x4bf   :  { %13 = sbr.rel (!%p11_p4) target bundleno = 1 (0x1), region = 76 }

</bundles_post_ra>
